<compile_context>
chip_gen: v7x
topology: tpu7x:2x2x1
jax: 0.10.0
libtpu: 0.0.40
codegen_flags: <defaults>
</compile_context>

<pallas_src>
import math

import jax
import jax.numpy as jnp
from jax.experimental import pallas as pl
from jax.experimental.pallas import tpu as pltpu  # noqa: F401  (kept for TPU-specific tuning hooks)

# ---------------------------------------------------------------------------
# Model hyper-parameters (small, consistent with a transformer encoder layer)
# ---------------------------------------------------------------------------
D_MODEL = 32
NHEAD = 4
DHEAD = D_MODEL // NHEAD
DIM_FF = 64
NUM_LAYERS = 2
SEQ = 8
BATCH = 2
LN_EPS = 1e-5
NEG_INF = -1e30

_WEIGHT_NAMES = ("wq", "bq", "wk", "bk", "wv", "bv", "wo", "bo",
                 "g1", "be1", "w1", "b1", "w2", "b2", "g2", "be2")


def _layer_norm(x, gamma, beta):
    mu = jnp.mean(x, axis=-1, keepdims=True)
    var = jnp.mean((x - mu) * (x - mu), axis=-1, keepdims=True)
    return (x - mu) * jax.lax.rsqrt(var + LN_EPS) * gamma + beta


# ---------------------------------------------------------------------------
# Pallas kernel: the FULL encoder (all layers, all batch & sequence positions)
# ---------------------------------------------------------------------------
def _encoder_kernel(x_ref, pos_ref, bmask_ref, hmask_ref,
                    wq_ref, bq_ref, wk_ref, bk_ref, wv_ref, bv_ref,
                    wo_ref, bo_ref, g1_ref, be1_ref,
                    w1_ref, b1_ref, w2_ref, b2_ref, g2_ref, be2_ref,
                    out_ref):
    """x_ref / pos_ref: (N, D), N = SEQ*BATCH, rows ordered (s, b) — i.e. the
    natural row-major flattening of the PyTorch (S, B, D) tensor, so no
    transpose is ever needed.  bmask_ref: (N, N) additive mask (0 for same-batch
    token pairs, -1e30 across batches).  hmask_ref: (NHEAD, 1, D) lane masks
    selecting each head's channels.  Weight refs are stacked over layers
    (leading dim NUM_LAYERS)."""
    x = x_ref[...].astype(jnp.float32)       # (N, D) — stays resident across layers
    p = pos_ref[...].astype(jnp.float32)     # (N, D)
    bmask = bmask_ref[...]                   # (N, N)
    scale = 1.0 / math.sqrt(DHEAD)

    for l in range(NUM_LAYERS):              # static unroll; weights loaded once/layer
        wq = wq_ref[l]; bq = bq_ref[l]
        wk = wk_ref[l]; bk = bk_ref[l]
        wv = wv_ref[l]; bv = bv_ref[l]
        wo = wo_ref[l]; bo = bo_ref[l]
        g1 = g1_ref[l]; be1 = be1_ref[l]
        w1 = w1_ref[l]; b1 = b1_ref[l]
        w2 = w2_ref[l]; b2 = b2_ref[l]
        g2 = g2_ref[l]; be2 = be2_ref[l]

        # ---- multi-head self attention (pos added to q & k only) ----
        qk_in = x + p
        q = (jnp.dot(qk_in, wq, preferred_element_type=jnp.float32) + bq) * scale
        k = jnp.dot(qk_in, wk, preferred_element_type=jnp.float32) + bk
        v = jnp.dot(x,     wv, preferred_element_type=jnp.float32) + bv

        # Per-head scores via lane masks on the full (N, D) Q/V + a
        # block-diagonal batch mask on the (N, N) score matrix: no lane
        # slicing, no concatenate, and every dot covers all S*B tokens.
        ctx = jnp.zeros_like(x)
        for h in range(NHEAD):
            hm = hmask_ref[h]                # (1, D) static slice, {0,1} lanes of head h
            s_h = jax.lax.dot_general(q * hm, k, (((1,), (1,)), ((), ())),
                                      preferred_element_type=jnp.float32)   # (N, N)
            s_h = s_h + bmask                                               # kill cross-batch
            s_h = s_h - jnp.max(s_h, axis=-1, keepdims=True)
            e = jnp.exp(s_h)
            a = e * pl.reciprocal(jnp.sum(e, axis=-1, keepdims=True), approx=True)
            ctx = ctx + jnp.dot(a, v * hm, preferred_element_type=jnp.float32)

        attn_out = jnp.dot(ctx, wo, preferred_element_type=jnp.float32) + bo

        # ---- residual + LayerNorm 1 ----
        x1 = _layer_norm(x + attn_out, g1, be1)

        # ---- feed-forward (ReLU) ----
        h1 = jnp.maximum(
            jnp.dot(x1, w1, preferred_element_type=jnp.float32) + b1, 0.0)
        ffn = jnp.dot(h1, w2, preferred_element_type=jnp.float32) + b2

        # ---- residual + LayerNorm 2 ----
        x = _layer_norm(x1 + ffn, g2, be2)

    out_ref[...] = x.astype(out_ref.dtype)


# ---------------------------------------------------------------------------
# Host-side helpers
# ---------------------------------------------------------------------------
def _attention_masks(S, B, D, nhead, dhead):
    """Constant masks built outside the kernel (hoisted, zero in-kernel cost)."""
    tok_b = jnp.arange(S * B, dtype=jnp.int32) % B          # batch id of each row (s, b)
    bmask = jnp.where(tok_b[:, None] == tok_b[None, :],
                      jnp.float32(0.0), jnp.float32(NEG_INF))        # (N, N)
    lane_head = jnp.arange(D, dtype=jnp.int32) // dhead
    hmask = (lane_head[None, :] ==
             jnp.arange(nhead, dtype=jnp.int32)[:, None]).astype(jnp.float32)
    return bmask, hmask[:, None, :]                                   # (N,N), (H,1,D)


@jax.jit
def transformer_encoder_forward(src_sbd, pos_sbd, params):
    """src/pos: (S, B, D) as in PyTorch.  Returns (1, S, B, D)."""
    S, B, D = src_sbd.shape
    n_tok = S * B
    # Row-major collapses are free (pure metadata) — no transposes anywhere.
    x = src_sbd.reshape(n_tok, D)
    p = pos_sbd.reshape(n_tok, D)
    bmask, hmask = _attention_masks(S, B, D, NHEAD, DHEAD)
    weights = [params[name] for name in _WEIGHT_NAMES]

    out = pl.pallas_call(
        _encoder_kernel,
        out_shape=jax.ShapeDtypeStruct((n_tok, D), src_sbd.dtype),
        # No grid: a single invocation covers all layers x batch x sequence;
        # every operand is a whole-array VMEM block (total ~70 KB).
    )(x, p, bmask, hmask, *weights)

    # norm=None, return_intermediate=False  ->  output.unsqueeze(0)
    return out.reshape(S, B, D)[None]


# ---------------------------------------------------------------------------
# Deterministic parameter init (weights stacked along a leading layer axis)
# ---------------------------------------------------------------------------
def init_encoder_params(key, num_layers=NUM_LAYERS):
    def one_layer(k):
        ks = jax.random.split(k, 16)
        s = 0.05
        return {
            "wq": jax.random.normal(ks[0], (D_MODEL, D_MODEL), jnp.float32) * s,
            "wk": jax.random.normal(ks[1], (D_MODEL, D_MODEL), jnp.float32) * s,
            "wv": jax.random.normal(ks[2], (D_MODEL, D_MODEL), jnp.float32) * s,
            "wo": jax.random.normal(ks[3], (D_MODEL, D_MODEL), jnp.float32) * s,
            "w1": jax.random.normal(ks[4], (D_MODEL, DIM_FF), jnp.float32) * s,
            "w2": jax.random.normal(ks[5], (DIM_FF, D_MODEL), jnp.float32) * s,
            "bq": jax.random.normal(ks[6], (1, D_MODEL), jnp.float32) * 0.02,
            "bk": jax.random.normal(ks[7], (1, D_MODEL), jnp.float32) * 0.02,
            "bv": jax.random.normal(ks[8], (1, D_MODEL), jnp.float32) * 0.02,
            "bo": jax.random.normal(ks[9], (1, D_MODEL), jnp.float32) * 0.02,
            "b1": jax.random.normal(ks[10], (1, DIM_FF), jnp.float32) * 0.02,
            "b2": jax.random.normal(ks[11], (1, D_MODEL), jnp.float32) * 0.02,
            "g1": 1.0 + jax.random.normal(ks[12], (1, D_MODEL), jnp.float32) * 0.1,
            "be1": jax.random.normal(ks[13], (1, D_MODEL), jnp.float32) * 0.05,
            "g2": 1.0 + jax.random.normal(ks[14], (1, D_MODEL), jnp.float32) * 0.1,
            "be2": jax.random.normal(ks[15], (1, D_MODEL), jnp.float32) * 0.05,
        }
    layers = [one_layer(k) for k in jax.random.split(key, num_layers)]
    return {name: jnp.stack([lp[name] for lp in layers]) for name in _WEIGHT_NAMES}


# ---------------------------------------------------------------------------
# Pure-JAX reference (standard per-head attention) for correctness checking
# ---------------------------------------------------------------------------
def transformer_encoder_reference(src_sbd, pos_sbd, params):
    S, B, D = src_sbd.shape
    hp = jax.lax.Precision.HIGHEST
    x = src_sbd
    for l in range(NUM_LAYERS):
        w = {name: params[name][l] for name in _WEIGHT_NAMES}
        qk_in = x + pos_sbd
        q = (jnp.einsum("sbd,de->sbe", qk_in, w["wq"], precision=hp) + w["bq"][0]) \
            * (1.0 / math.sqrt(DHEAD))
        k = jnp.einsum("sbd,de->sbe", qk_in, w["wk"], precision=hp) + w["bk"][0]
        v = jnp.einsum("sbd,de->sbe", x, w["wv"], precision=hp) + w["bv"][0]
        qh = q.reshape(S, B, NHEAD, DHEAD)
        kh = k.reshape(S, B, NHEAD, DHEAD)
        vh = v.reshape(S, B, NHEAD, DHEAD)
        scores = jnp.einsum("ibhd,jbhd->bhij", qh, kh, precision=hp)
        attn = jax.nn.softmax(scores, axis=-1)
        ctx = jnp.einsum("bhij,jbhd->ibhd", attn, vh, precision=hp).reshape(S, B, D)
        attn_out = jnp.einsum("sbd,de->sbe", ctx, w["wo"], precision=hp) + w["bo"][0]
        x1 = _layer_norm(x + attn_out, w["g1"][0], w["be1"][0])
        h1 = jax.nn.relu(jnp.einsum("sbd,df->sbf", x1, w["w1"], precision=hp) + w["b1"][0])
        ffn = jnp.einsum("sbf,fd->sbd", h1, w["w2"], precision=hp) + w["b2"][0]
        x = _layer_norm(x1 + ffn, w["g2"][0], w["be2"][0])
    return x[None]


if __name__ == "__main__":
    key = jax.random.PRNGKey(0)
    k_src, k_pos, k_par = jax.random.split(key, 3)

    # PyTorch transformer encoder convention: (S, B, D)
    src = jax.random.normal(k_src, (SEQ, BATCH, D_MODEL), jnp.float32)
    pos = jax.random.normal(k_pos, (SEQ, BATCH, D_MODEL), jnp.float32)
    params = init_encoder_params(k_par, NUM_LAYERS)

    out = transformer_encoder_forward(src, pos, params)
    out = jax.block_until_ready(out)

    assert out.shape == (1, SEQ, BATCH, D_MODEL), out.shape
    assert bool(jnp.all(jnp.isfinite(out)))

    ref = transformer_encoder_reference(src, pos, params)
    max_err = float(jnp.max(jnp.abs(out - ref)))
    assert max_err < 5e-2, f"max abs error vs reference: {max_err}"

    print("KERNEL_OK")
</pallas_src>

<mosaic_0001>
module attributes {stable_mosaic.version = 11 : i64} {
  func.func @_encoder_kernel(%arg0: memref<16x32xf32, #tpu.memory_space<vmem>>, %arg1: memref<16x32xf32, #tpu.memory_space<vmem>>, %arg2: memref<16x16xf32, #tpu.memory_space<vmem>>, %arg3: memref<4x1x32xf32, #tpu.memory_space<vmem>>, %arg4: memref<2x32x32xf32, #tpu.memory_space<vmem>>, %arg5: memref<2x1x32xf32, #tpu.memory_space<vmem>>, %arg6: memref<2x32x32xf32, #tpu.memory_space<vmem>>, %arg7: memref<2x1x32xf32, #tpu.memory_space<vmem>>, %arg8: memref<2x32x32xf32, #tpu.memory_space<vmem>>, %arg9: memref<2x1x32xf32, #tpu.memory_space<vmem>>, %arg10: memref<2x32x32xf32, #tpu.memory_space<vmem>>, %arg11: memref<2x1x32xf32, #tpu.memory_space<vmem>>, %arg12: memref<2x1x32xf32, #tpu.memory_space<vmem>>, %arg13: memref<2x1x32xf32, #tpu.memory_space<vmem>>, %arg14: memref<2x32x64xf32, #tpu.memory_space<vmem>>, %arg15: memref<2x1x64xf32, #tpu.memory_space<vmem>>, %arg16: memref<2x64x32xf32, #tpu.memory_space<vmem>>, %arg17: memref<2x1x32xf32, #tpu.memory_space<vmem>>, %arg18: memref<2x1x32xf32, #tpu.memory_space<vmem>>, %arg19: memref<2x1x32xf32, #tpu.memory_space<vmem>>, %arg20: memref<16x32xf32, #tpu.memory_space<vmem>>) attributes {dimension_semantics = [], scalar_prefetch = 0 : i64, scratch_operands = 0 : i64, tpu.core_type = #tpu.core_type<tc>} {
    %c0 = arith.constant 0 : index
    %c0_0 = arith.constant 0 : index
    %0 = vector.load %arg0[%c0, %c0_0] : memref<16x32xf32, #tpu.memory_space<vmem>>, vector<16x32xf32>
    %c0_1 = arith.constant 0 : index
    %c0_2 = arith.constant 0 : index
    %1 = vector.load %arg1[%c0_1, %c0_2] : memref<16x32xf32, #tpu.memory_space<vmem>>, vector<16x32xf32>
    %c0_3 = arith.constant 0 : index
    %c0_4 = arith.constant 0 : index
    %2 = vector.load %arg2[%c0_3, %c0_4] : memref<16x16xf32, #tpu.memory_space<vmem>>, vector<16x16xf32>
    %c0_5 = arith.constant 0 : index
    %c0_6 = arith.constant 0 : index
    %c0_7 = arith.constant 0 : index
    %3 = vector.load %arg4[%c0_5, %c0_6, %c0_7] : memref<2x32x32xf32, #tpu.memory_space<vmem>>, vector<1x32x32xf32>
    %4 = vector.shape_cast %3 : vector<1x32x32xf32> to vector<32x32xf32>
    %c0_8 = arith.constant 0 : index
    %c0_9 = arith.constant 0 : index
    %c0_10 = arith.constant 0 : index
    %5 = vector.load %arg5[%c0_8, %c0_9, %c0_10] : memref<2x1x32xf32, #tpu.memory_space<vmem>>, vector<1x1x32xf32>
    %6 = vector.shape_cast %5 : vector<1x1x32xf32> to vector<1x32xf32>
    %c0_11 = arith.constant 0 : index
    %c0_12 = arith.constant 0 : index
    %c0_13 = arith.constant 0 : index
    %7 = vector.load %arg6[%c0_11, %c0_12, %c0_13] : memref<2x32x32xf32, #tpu.memory_space<vmem>>, vector<1x32x32xf32>
    %8 = vector.shape_cast %7 : vector<1x32x32xf32> to vector<32x32xf32>
    %c0_14 = arith.constant 0 : index
    %c0_15 = arith.constant 0 : index
    %c0_16 = arith.constant 0 : index
    %9 = vector.load %arg7[%c0_14, %c0_15, %c0_16] : memref<2x1x32xf32, #tpu.memory_space<vmem>>, vector<1x1x32xf32>
    %10 = vector.shape_cast %9 : vector<1x1x32xf32> to vector<1x32xf32>
    %c0_17 = arith.constant 0 : index
    %c0_18 = arith.constant 0 : index
    %c0_19 = arith.constant 0 : index
    %11 = vector.load %arg8[%c0_17, %c0_18, %c0_19] : memref<2x32x32xf32, #tpu.memory_space<vmem>>, vector<1x32x32xf32>
    %12 = vector.shape_cast %11 : vector<1x32x32xf32> to vector<32x32xf32>
    %c0_20 = arith.constant 0 : index
    %c0_21 = arith.constant 0 : index
    %c0_22 = arith.constant 0 : index
    %13 = vector.load %arg9[%c0_20, %c0_21, %c0_22] : memref<2x1x32xf32, #tpu.memory_space<vmem>>, vector<1x1x32xf32>
    %14 = vector.shape_cast %13 : vector<1x1x32xf32> to vector<1x32xf32>
    %c0_23 = arith.constant 0 : index
    %c0_24 = arith.constant 0 : index
    %c0_25 = arith.constant 0 : index
    %15 = vector.load %arg10[%c0_23, %c0_24, %c0_25] : memref<2x32x32xf32, #tpu.memory_space<vmem>>, vector<1x32x32xf32>
    %16 = vector.shape_cast %15 : vector<1x32x32xf32> to vector<32x32xf32>
    %c0_26 = arith.constant 0 : index
    %c0_27 = arith.constant 0 : index
    %c0_28 = arith.constant 0 : index
    %17 = vector.load %arg11[%c0_26, %c0_27, %c0_28] : memref<2x1x32xf32, #tpu.memory_space<vmem>>, vector<1x1x32xf32>
    %18 = vector.shape_cast %17 : vector<1x1x32xf32> to vector<1x32xf32>
    %c0_29 = arith.constant 0 : index
    %c0_30 = arith.constant 0 : index
    %c0_31 = arith.constant 0 : index
    %19 = vector.load %arg12[%c0_29, %c0_30, %c0_31] : memref<2x1x32xf32, #tpu.memory_space<vmem>>, vector<1x1x32xf32>
    %20 = vector.shape_cast %19 : vector<1x1x32xf32> to vector<1x32xf32>
    %c0_32 = arith.constant 0 : index
    %c0_33 = arith.constant 0 : index
    %c0_34 = arith.constant 0 : index
    %21 = vector.load %arg13[%c0_32, %c0_33, %c0_34] : memref<2x1x32xf32, #tpu.memory_space<vmem>>, vector<1x1x32xf32>
    %22 = vector.shape_cast %21 : vector<1x1x32xf32> to vector<1x32xf32>
    %c0_35 = arith.constant 0 : index
    %c0_36 = arith.constant 0 : index
    %c0_37 = arith.constant 0 : index
    %23 = vector.load %arg14[%c0_35, %c0_36, %c0_37] : memref<2x32x64xf32, #tpu.memory_space<vmem>>, vector<1x32x64xf32>
    %24 = vector.shape_cast %23 : vector<1x32x64xf32> to vector<32x64xf32>
    %c0_38 = arith.constant 0 : index
    %c0_39 = arith.constant 0 : index
    %c0_40 = arith.constant 0 : index
    %25 = vector.load %arg15[%c0_38, %c0_39, %c0_40] : memref<2x1x64xf32, #tpu.memory_space<vmem>>, vector<1x1x64xf32>
    %26 = vector.shape_cast %25 : vector<1x1x64xf32> to vector<1x64xf32>
    %c0_41 = arith.constant 0 : index
    %c0_42 = arith.constant 0 : index
    %c0_43 = arith.constant 0 : index
    %27 = vector.load %arg16[%c0_41, %c0_42, %c0_43] : memref<2x64x32xf32, #tpu.memory_space<vmem>>, vector<1x64x32xf32>
    %28 = vector.shape_cast %27 : vector<1x64x32xf32> to vector<64x32xf32>
    %c0_44 = arith.constant 0 : index
    %c0_45 = arith.constant 0 : index
    %c0_46 = arith.constant 0 : index
    %29 = vector.load %arg17[%c0_44, %c0_45, %c0_46] : memref<2x1x32xf32, #tpu.memory_space<vmem>>, vector<1x1x32xf32>
    %30 = vector.shape_cast %29 : vector<1x1x32xf32> to vector<1x32xf32>
    %c0_47 = arith.constant 0 : index
    %c0_48 = arith.constant 0 : index
    %c0_49 = arith.constant 0 : index
    %31 = vector.load %arg18[%c0_47, %c0_48, %c0_49] : memref<2x1x32xf32, #tpu.memory_space<vmem>>, vector<1x1x32xf32>
    %32 = vector.shape_cast %31 : vector<1x1x32xf32> to vector<1x32xf32>
    %c0_50 = arith.constant 0 : index
    %c0_51 = arith.constant 0 : index
    %c0_52 = arith.constant 0 : index
    %33 = vector.load %arg19[%c0_50, %c0_51, %c0_52] : memref<2x1x32xf32, #tpu.memory_space<vmem>>, vector<1x1x32xf32>
    %34 = vector.shape_cast %33 : vector<1x1x32xf32> to vector<1x32xf32>
    %35 = arith.addf %0, %1 : vector<16x32xf32>
    %cst = arith.constant dense<0.000000e+00> : vector<16x32xf32>
    %36 = tpu.matmul %35, %4, %cst {dimension_numbers = #tpu.dot_dimension_numbers<[1], [0], [0], [1], [0, 0, 1, 1], [], []>} : vector<16x32xf32>, vector<32x32xf32>, vector<16x32xf32> -> vector<16x32xf32>
    %37 = vector.broadcast %6 : vector<1x32xf32> to vector<16x32xf32>
    %38 = arith.addf %36, %37 : vector<16x32xf32>
    %cst_53 = arith.constant 0.353553385 : f32
    %39 = vector.broadcast %cst_53 : f32 to vector<16x32xf32>
    %40 = arith.mulf %38, %39 : vector<16x32xf32>
    %cst_54 = arith.constant dense<0.000000e+00> : vector<16x32xf32>
    %41 = tpu.matmul %35, %8, %cst_54 {dimension_numbers = #tpu.dot_dimension_numbers<[1], [0], [0], [1], [0, 0, 1, 1], [], []>} : vector<16x32xf32>, vector<32x32xf32>, vector<16x32xf32> -> vector<16x32xf32>
    %42 = vector.broadcast %10 : vector<1x32xf32> to vector<16x32xf32>
    %43 = arith.addf %41, %42 : vector<16x32xf32>
    %cst_55 = arith.constant dense<0.000000e+00> : vector<16x32xf32>
    %44 = tpu.matmul %0, %12, %cst_55 {dimension_numbers = #tpu.dot_dimension_numbers<[1], [0], [0], [1], [0, 0, 1, 1], [], []>} : vector<16x32xf32>, vector<32x32xf32>, vector<16x32xf32> -> vector<16x32xf32>
    %45 = vector.broadcast %14 : vector<1x32xf32> to vector<16x32xf32>
    %46 = arith.addf %44, %45 : vector<16x32xf32>
    %cst_56 = arith.constant 0.000000e+00 : f32
    %47 = vector.broadcast %cst_56 : f32 to vector<16x32xf32>
    %c0_57 = arith.constant 0 : index
    %c0_58 = arith.constant 0 : index
    %c0_59 = arith.constant 0 : index
    %48 = vector.load %arg3[%c0_57, %c0_58, %c0_59] : memref<4x1x32xf32, #tpu.memory_space<vmem>>, vector<1x1x32xf32>
    %49 = vector.shape_cast %48 : vector<1x1x32xf32> to vector<1x32xf32>
    %50 = vector.broadcast %49 : vector<1x32xf32> to vector<16x32xf32>
    %51 = arith.mulf %40, %50 : vector<16x32xf32>
    %cst_60 = arith.constant dense<0.000000e+00> : vector<16x16xf32>
    %52 = tpu.matmul %51, %43, %cst_60 {dimension_numbers = #tpu.dot_dimension_numbers<[1], [1], [0], [0], [0, 0, 1, 0], [], []>} : vector<16x32xf32>, vector<16x32xf32>, vector<16x16xf32> -> vector<16x16xf32>
    %53 = arith.addf %52, %2 : vector<16x16xf32>
    %cst_61 = arith.constant dense<0xFF800000> : vector<16xf32>
    %54 = vector.multi_reduction <maximumf>, %53, %cst_61 [1] : vector<16x16xf32> to vector<16xf32>
    %55 = vector.shape_cast %54 : vector<16xf32> to vector<16x1xf32>
    %56 = vector.broadcast %55 : vector<16x1xf32> to vector<16x16xf32>
    %57 = arith.subf %53, %56 : vector<16x16xf32>
    %58 = math.exp %57 : vector<16x16xf32>
    %cst_62 = arith.constant dense<0.000000e+00> : vector<16xf32>
    %59 = vector.multi_reduction <add>, %58, %cst_62 [1] : vector<16x16xf32> to vector<16xf32>
    %60 = vector.shape_cast %59 : vector<16xf32> to vector<16x1xf32>
    %61 = tpu.reciprocal %60 {approx = true} : vector<16x1xf32> -> vector<16x1xf32>
    %62 = vector.broadcast %61 : vector<16x1xf32> to vector<16x16xf32>
    %63 = arith.mulf %58, %62 : vector<16x16xf32>
    %64 = vector.broadcast %49 : vector<1x32xf32> to vector<16x32xf32>
    %65 = arith.mulf %46, %64 : vector<16x32xf32>
    %cst_63 = arith.constant dense<0.000000e+00> : vector<16x32xf32>
    %66 = tpu.matmul %63, %65, %cst_63 {dimension_numbers = #tpu.dot_dimension_numbers<[1], [0], [0], [1], [0, 0, 1, 1], [], []>} : vector<16x16xf32>, vector<16x32xf32>, vector<16x32xf32> -> vector<16x32xf32>
    %67 = arith.addf %47, %66 : vector<16x32xf32>
    %c1 = arith.constant 1 : index
    %c0_64 = arith.constant 0 : index
    %c0_65 = arith.constant 0 : index
    %68 = vector.load %arg3[%c1, %c0_64, %c0_65] : memref<4x1x32xf32, #tpu.memory_space<vmem>>, vector<1x1x32xf32>
    %69 = vector.shape_cast %68 : vector<1x1x32xf32> to vector<1x32xf32>
    %70 = vector.broadcast %69 : vector<1x32xf32> to vector<16x32xf32>
    %71 = arith.mulf %40, %70 : vector<16x32xf32>
    %cst_66 = arith.constant dense<0.000000e+00> : vector<16x16xf32>
    %72 = tpu.matmul %71, %43, %cst_66 {dimension_numbers = #tpu.dot_dimension_numbers<[1], [1], [0], [0], [0, 0, 1, 0], [], []>} : vector<16x32xf32>, vector<16x32xf32>, vector<16x16xf32> -> vector<16x16xf32>
    %73 = arith.addf %72, %2 : vector<16x16xf32>
    %cst_67 = arith.constant dense<0xFF800000> : vector<16xf32>
    %74 = vector.multi_reduction <maximumf>, %73, %cst_67 [1] : vector<16x16xf32> to vector<16xf32>
    %75 = vector.shape_cast %74 : vector<16xf32> to vector<16x1xf32>
    %76 = vector.broadcast %75 : vector<16x1xf32> to vector<16x16xf32>
    %77 = arith.subf %73, %76 : vector<16x16xf32>
    %78 = math.exp %77 : vector<16x16xf32>
    %cst_68 = arith.constant dense<0.000000e+00> : vector<16xf32>
    %79 = vector.multi_reduction <add>, %78, %cst_68 [1] : vector<16x16xf32> to vector<16xf32>
    %80 = vector.shape_cast %79 : vector<16xf32> to vector<16x1xf32>
    %81 = tpu.reciprocal %80 {approx = true} : vector<16x1xf32> -> vector<16x1xf32>
    %82 = vector.broadcast %81 : vector<16x1xf32> to vector<16x16xf32>
    %83 = arith.mulf %78, %82 : vector<16x16xf32>
    %84 = vector.broadcast %69 : vector<1x32xf32> to vector<16x32xf32>
    %85 = arith.mulf %46, %84 : vector<16x32xf32>
    %cst_69 = arith.constant dense<0.000000e+00> : vector<16x32xf32>
    %86 = tpu.matmul %83, %85, %cst_69 {dimension_numbers = #tpu.dot_dimension_numbers<[1], [0], [0], [1], [0, 0, 1, 1], [], []>} : vector<16x16xf32>, vector<16x32xf32>, vector<16x32xf32> -> vector<16x32xf32>
    %87 = arith.addf %67, %86 : vector<16x32xf32>
    %c2 = arith.constant 2 : index
    %c0_70 = arith.constant 0 : index
    %c0_71 = arith.constant 0 : index
    %88 = vector.load %arg3[%c2, %c0_70, %c0_71] : memref<4x1x32xf32, #tpu.memory_space<vmem>>, vector<1x1x32xf32>
    %89 = vector.shape_cast %88 : vector<1x1x32xf32> to vector<1x32xf32>
    %90 = vector.broadcast %89 : vector<1x32xf32> to vector<16x32xf32>
    %91 = arith.mulf %40, %90 : vector<16x32xf32>
    %cst_72 = arith.constant dense<0.000000e+00> : vector<16x16xf32>
    %92 = tpu.matmul %91, %43, %cst_72 {dimension_numbers = #tpu.dot_dimension_numbers<[1], [1], [0], [0], [0, 0, 1, 0], [], []>} : vector<16x32xf32>, vector<16x32xf32>, vector<16x16xf32> -> vector<16x16xf32>
    %93 = arith.addf %92, %2 : vector<16x16xf32>
    %cst_73 = arith.constant dense<0xFF800000> : vector<16xf32>
    %94 = vector.multi_reduction <maximumf>, %93, %cst_73 [1] : vector<16x16xf32> to vector<16xf32>
    %95 = vector.shape_cast %94 : vector<16xf32> to vector<16x1xf32>
    %96 = vector.broadcast %95 : vector<16x1xf32> to vector<16x16xf32>
    %97 = arith.subf %93, %96 : vector<16x16xf32>
    %98 = math.exp %97 : vector<16x16xf32>
    %cst_74 = arith.constant dense<0.000000e+00> : vector<16xf32>
    %99 = vector.multi_reduction <add>, %98, %cst_74 [1] : vector<16x16xf32> to vector<16xf32>
    %100 = vector.shape_cast %99 : vector<16xf32> to vector<16x1xf32>
    %101 = tpu.reciprocal %100 {approx = true} : vector<16x1xf32> -> vector<16x1xf32>
    %102 = vector.broadcast %101 : vector<16x1xf32> to vector<16x16xf32>
    %103 = arith.mulf %98, %102 : vector<16x16xf32>
    %104 = vector.broadcast %89 : vector<1x32xf32> to vector<16x32xf32>
    %105 = arith.mulf %46, %104 : vector<16x32xf32>
    %cst_75 = arith.constant dense<0.000000e+00> : vector<16x32xf32>
    %106 = tpu.matmul %103, %105, %cst_75 {dimension_numbers = #tpu.dot_dimension_numbers<[1], [0], [0], [1], [0, 0, 1, 1], [], []>} : vector<16x16xf32>, vector<16x32xf32>, vector<16x32xf32> -> vector<16x32xf32>
    %107 = arith.addf %87, %106 : vector<16x32xf32>
    %c3 = arith.constant 3 : index
    %c0_76 = arith.constant 0 : index
    %c0_77 = arith.constant 0 : index
    %108 = vector.load %arg3[%c3, %c0_76, %c0_77] : memref<4x1x32xf32, #tpu.memory_space<vmem>>, vector<1x1x32xf32>
    %109 = vector.shape_cast %108 : vector<1x1x32xf32> to vector<1x32xf32>
    %110 = vector.broadcast %109 : vector<1x32xf32> to vector<16x32xf32>
    %111 = arith.mulf %40, %110 : vector<16x32xf32>
    %cst_78 = arith.constant dense<0.000000e+00> : vector<16x16xf32>
    %112 = tpu.matmul %111, %43, %cst_78 {dimension_numbers = #tpu.dot_dimension_numbers<[1], [1], [0], [0], [0, 0, 1, 0], [], []>} : vector<16x32xf32>, vector<16x32xf32>, vector<16x16xf32> -> vector<16x16xf32>
    %113 = arith.addf %112, %2 : vector<16x16xf32>
    %cst_79 = arith.constant dense<0xFF800000> : vector<16xf32>
    %114 = vector.multi_reduction <maximumf>, %113, %cst_79 [1] : vector<16x16xf32> to vector<16xf32>
    %115 = vector.shape_cast %114 : vector<16xf32> to vector<16x1xf32>
    %116 = vector.broadcast %115 : vector<16x1xf32> to vector<16x16xf32>
    %117 = arith.subf %113, %116 : vector<16x16xf32>
    %118 = math.exp %117 : vector<16x16xf32>
    %cst_80 = arith.constant dense<0.000000e+00> : vector<16xf32>
    %119 = vector.multi_reduction <add>, %118, %cst_80 [1] : vector<16x16xf32> to vector<16xf32>
    %120 = vector.shape_cast %119 : vector<16xf32> to vector<16x1xf32>
    %121 = tpu.reciprocal %120 {approx = true} : vector<16x1xf32> -> vector<16x1xf32>
    %122 = vector.broadcast %121 : vector<16x1xf32> to vector<16x16xf32>
    %123 = arith.mulf %118, %122 : vector<16x16xf32>
    %124 = vector.broadcast %109 : vector<1x32xf32> to vector<16x32xf32>
    %125 = arith.mulf %46, %124 : vector<16x32xf32>
    %cst_81 = arith.constant dense<0.000000e+00> : vector<16x32xf32>
    %126 = tpu.matmul %123, %125, %cst_81 {dimension_numbers = #tpu.dot_dimension_numbers<[1], [0], [0], [1], [0, 0, 1, 1], [], []>} : vector<16x16xf32>, vector<16x32xf32>, vector<16x32xf32> -> vector<16x32xf32>
    %127 = arith.addf %107, %126 : vector<16x32xf32>
    %cst_82 = arith.constant dense<0.000000e+00> : vector<16x32xf32>
    %128 = tpu.matmul %127, %16, %cst_82 {dimension_numbers = #tpu.dot_dimension_numbers<[1], [0], [0], [1], [0, 0, 1, 1], [], []>} : vector<16x32xf32>, vector<32x32xf32>, vector<16x32xf32> -> vector<16x32xf32>
    %129 = vector.broadcast %18 : vector<1x32xf32> to vector<16x32xf32>
    %130 = arith.addf %128, %129 : vector<16x32xf32>
    %131 = arith.addf %0, %130 : vector<16x32xf32>
    %cst_83 = arith.constant dense<0.000000e+00> : vector<16xf32>
    %132 = vector.multi_reduction <add>, %131, %cst_83 [1] : vector<16x32xf32> to vector<16xf32>
    %133 = vector.shape_cast %132 : vector<16xf32> to vector<16x1xf32>
    %cst_84 = arith.constant 3.200000e+01 : f32
    %134 = vector.broadcast %cst_84 : f32 to vector<16x1xf32>
    %135 = arith.divf %133, %134 : vector<16x1xf32>
    %136 = vector.broadcast %135 : vector<16x1xf32> to vector<16x32xf32>
    %137 = arith.subf %131, %136 : vector<16x32xf32>
    %138 = vector.broadcast %135 : vector<16x1xf32> to vector<16x32xf32>
    %139 = arith.subf %131, %138 : vector<16x32xf32>
    %140 = arith.mulf %137, %139 : vector<16x32xf32>
    %cst_85 = arith.constant dense<0.000000e+00> : vector<16xf32>
    %141 = vector.multi_reduction <add>, %140, %cst_85 [1] : vector<16x32xf32> to vector<16xf32>
    %142 = vector.shape_cast %141 : vector<16xf32> to vector<16x1xf32>
    %cst_86 = arith.constant 3.200000e+01 : f32
    %143 = vector.broadcast %cst_86 : f32 to vector<16x1xf32>
    %144 = arith.divf %142, %143 : vector<16x1xf32>
    %145 = vector.broadcast %135 : vector<16x1xf32> to vector<16x32xf32>
    %146 = arith.subf %131, %145 : vector<16x32xf32>
    %cst_87 = arith.constant 9.99999974E-6 : f32
    %147 = vector.broadcast %cst_87 : f32 to vector<16x1xf32>
    %148 = arith.addf %144, %147 : vector<16x1xf32>
    %149 = math.rsqrt %148 : vector<16x1xf32>
    %150 = vector.broadcast %149 : vector<16x1xf32> to vector<16x32xf32>
    %151 = arith.mulf %146, %150 : vector<16x32xf32>
    %152 = vector.broadcast %20 : vector<1x32xf32> to vector<16x32xf32>
    %153 = arith.mulf %151, %152 : vector<16x32xf32>
    %154 = vector.broadcast %22 : vector<1x32xf32> to vector<16x32xf32>
    %155 = arith.addf %153, %154 : vector<16x32xf32>
    %cst_88 = arith.constant dense<0.000000e+00> : vector<16x64xf32>
    %156 = tpu.matmul %155, %24, %cst_88 {dimension_numbers = #tpu.dot_dimension_numbers<[1], [0], [0], [1], [0, 0, 1, 1], [], []>} : vector<16x32xf32>, vector<32x64xf32>, vector<16x64xf32> -> vector<16x64xf32>
    %157 = vector.broadcast %26 : vector<1x64xf32> to vector<16x64xf32>
    %158 = arith.addf %156, %157 : vector<16x64xf32>
    %cst_89 = arith.constant 0.000000e+00 : f32
    %159 = vector.broadcast %cst_89 : f32 to vector<16x64xf32>
    %160 = arith.maximumf %158, %159 : vector<16x64xf32>
    %cst_90 = arith.constant dense<0.000000e+00> : vector<16x32xf32>
    %161 = tpu.matmul %160, %28, %cst_90 {dimension_numbers = #tpu.dot_dimension_numbers<[1], [0], [0], [1], [0, 0, 1, 1], [], []>} : vector<16x64xf32>, vector<64x32xf32>, vector<16x32xf32> -> vector<16x32xf32>
    %162 = vector.broadcast %30 : vector<1x32xf32> to vector<16x32xf32>
    %163 = arith.addf %161, %162 : vector<16x32xf32>
    %164 = arith.addf %155, %163 : vector<16x32xf32>
    %cst_91 = arith.constant dense<0.000000e+00> : vector<16xf32>
    %165 = vector.multi_reduction <add>, %164, %cst_91 [1] : vector<16x32xf32> to vector<16xf32>
    %166 = vector.shape_cast %165 : vector<16xf32> to vector<16x1xf32>
    %cst_92 = arith.constant 3.200000e+01 : f32
    %167 = vector.broadcast %cst_92 : f32 to vector<16x1xf32>
    %168 = arith.divf %166, %167 : vector<16x1xf32>
    %169 = vector.broadcast %168 : vector<16x1xf32> to vector<16x32xf32>
    %170 = arith.subf %164, %169 : vector<16x32xf32>
    %171 = vector.broadcast %168 : vector<16x1xf32> to vector<16x32xf32>
    %172 = arith.subf %164, %171 : vector<16x32xf32>
    %173 = arith.mulf %170, %172 : vector<16x32xf32>
    %cst_93 = arith.constant dense<0.000000e+00> : vector<16xf32>
    %174 = vector.multi_reduction <add>, %173, %cst_93 [1] : vector<16x32xf32> to vector<16xf32>
    %175 = vector.shape_cast %174 : vector<16xf32> to vector<16x1xf32>
    %cst_94 = arith.constant 3.200000e+01 : f32
    %176 = vector.broadcast %cst_94 : f32 to vector<16x1xf32>
    %177 = arith.divf %175, %176 : vector<16x1xf32>
    %178 = vector.broadcast %168 : vector<16x1xf32> to vector<16x32xf32>
    %179 = arith.subf %164, %178 : vector<16x32xf32>
    %cst_95 = arith.constant 9.99999974E-6 : f32
    %180 = vector.broadcast %cst_95 : f32 to vector<16x1xf32>
    %181 = arith.addf %177, %180 : vector<16x1xf32>
    %182 = math.rsqrt %181 : vector<16x1xf32>
    %183 = vector.broadcast %182 : vector<16x1xf32> to vector<16x32xf32>
    %184 = arith.mulf %179, %183 : vector<16x32xf32>
    %185 = vector.broadcast %32 : vector<1x32xf32> to vector<16x32xf32>
    %186 = arith.mulf %184, %185 : vector<16x32xf32>
    %187 = vector.broadcast %34 : vector<1x32xf32> to vector<16x32xf32>
    %188 = arith.addf %186, %187 : vector<16x32xf32>
    %c1_96 = arith.constant 1 : index
    %c0_97 = arith.constant 0 : index
    %c0_98 = arith.constant 0 : index
    %189 = vector.load %arg4[%c1_96, %c0_97, %c0_98] : memref<2x32x32xf32, #tpu.memory_space<vmem>>, vector<1x32x32xf32>
    %190 = vector.shape_cast %189 : vector<1x32x32xf32> to vector<32x32xf32>
    %c1_99 = arith.constant 1 : index
    %c0_100 = arith.constant 0 : index
    %c0_101 = arith.constant 0 : index
    %191 = vector.load %arg5[%c1_99, %c0_100, %c0_101] : memref<2x1x32xf32, #tpu.memory_space<vmem>>, vector<1x1x32xf32>
    %192 = vector.shape_cast %191 : vector<1x1x32xf32> to vector<1x32xf32>
    %c1_102 = arith.constant 1 : index
    %c0_103 = arith.constant 0 : index
    %c0_104 = arith.constant 0 : index
    %193 = vector.load %arg6[%c1_102, %c0_103, %c0_104] : memref<2x32x32xf32, #tpu.memory_space<vmem>>, vector<1x32x32xf32>
    %194 = vector.shape_cast %193 : vector<1x32x32xf32> to vector<32x32xf32>
    %c1_105 = arith.constant 1 : index
    %c0_106 = arith.constant 0 : index
    %c0_107 = arith.constant 0 : index
    %195 = vector.load %arg7[%c1_105, %c0_106, %c0_107] : memref<2x1x32xf32, #tpu.memory_space<vmem>>, vector<1x1x32xf32>
    %196 = vector.shape_cast %195 : vector<1x1x32xf32> to vector<1x32xf32>
    %c1_108 = arith.constant 1 : index
    %c0_109 = arith.constant 0 : index
    %c0_110 = arith.constant 0 : index
    %197 = vector.load %arg8[%c1_108, %c0_109, %c0_110] : memref<2x32x32xf32, #tpu.memory_space<vmem>>, vector<1x32x32xf32>
    %198 = vector.shape_cast %197 : vector<1x32x32xf32> to vector<32x32xf32>
    %c1_111 = arith.constant 1 : index
    %c0_112 = arith.constant 0 : index
    %c0_113 = arith.constant 0 : index
    %199 = vector.load %arg9[%c1_111, %c0_112, %c0_113] : memref<2x1x32xf32, #tpu.memory_space<vmem>>, vector<1x1x32xf32>
    %200 = vector.shape_cast %199 : vector<1x1x32xf32> to vector<1x32xf32>
    %c1_114 = arith.constant 1 : index
    %c0_115 = arith.constant 0 : index
    %c0_116 = arith.constant 0 : index
    %201 = vector.load %arg10[%c1_114, %c0_115, %c0_116] : memref<2x32x32xf32, #tpu.memory_space<vmem>>, vector<1x32x32xf32>
    %202 = vector.shape_cast %201 : vector<1x32x32xf32> to vector<32x32xf32>
    %c1_117 = arith.constant 1 : index
    %c0_118 = arith.constant 0 : index
    %c0_119 = arith.constant 0 : index
    %203 = vector.load %arg11[%c1_117, %c0_118, %c0_119] : memref<2x1x32xf32, #tpu.memory_space<vmem>>, vector<1x1x32xf32>
    %204 = vector.shape_cast %203 : vector<1x1x32xf32> to vector<1x32xf32>
    %c1_120 = arith.constant 1 : index
    %c0_121 = arith.constant 0 : index
    %c0_122 = arith.constant 0 : index
    %205 = vector.load %arg12[%c1_120, %c0_121, %c0_122] : memref<2x1x32xf32, #tpu.memory_space<vmem>>, vector<1x1x32xf32>
    %206 = vector.shape_cast %205 : vector<1x1x32xf32> to vector<1x32xf32>
    %c1_123 = arith.constant 1 : index
    %c0_124 = arith.constant 0 : index
    %c0_125 = arith.constant 0 : index
    %207 = vector.load %arg13[%c1_123, %c0_124, %c0_125] : memref<2x1x32xf32, #tpu.memory_space<vmem>>, vector<1x1x32xf32>
    %208 = vector.shape_cast %207 : vector<1x1x32xf32> to vector<1x32xf32>
    %c1_126 = arith.constant 1 : index
    %c0_127 = arith.constant 0 : index
    %c0_128 = arith.constant 0 : index
    %209 = vector.load %arg14[%c1_126, %c0_127, %c0_128] : memref<2x32x64xf32, #tpu.memory_space<vmem>>, vector<1x32x64xf32>
    %210 = vector.shape_cast %209 : vector<1x32x64xf32> to vector<32x64xf32>
    %c1_129 = arith.constant 1 : index
    %c0_130 = arith.constant 0 : index
    %c0_131 = arith.constant 0 : index
    %211 = vector.load %arg15[%c1_129, %c0_130, %c0_131] : memref<2x1x64xf32, #tpu.memory_space<vmem>>, vector<1x1x64xf32>
    %212 = vector.shape_cast %211 : vector<1x1x64xf32> to vector<1x64xf32>
    %c1_132 = arith.constant 1 : index
    %c0_133 = arith.constant 0 : index
    %c0_134 = arith.constant 0 : index
    %213 = vector.load %arg16[%c1_132, %c0_133, %c0_134] : memref<2x64x32xf32, #tpu.memory_space<vmem>>, vector<1x64x32xf32>
    %214 = vector.shape_cast %213 : vector<1x64x32xf32> to vector<64x32xf32>
    %c1_135 = arith.constant 1 : index
    %c0_136 = arith.constant 0 : index
    %c0_137 = arith.constant 0 : index
    %215 = vector.load %arg17[%c1_135, %c0_136, %c0_137] : memref<2x1x32xf32, #tpu.memory_space<vmem>>, vector<1x1x32xf32>
    %216 = vector.shape_cast %215 : vector<1x1x32xf32> to vector<1x32xf32>
    %c1_138 = arith.constant 1 : index
    %c0_139 = arith.constant 0 : index
    %c0_140 = arith.constant 0 : index
    %217 = vector.load %arg18[%c1_138, %c0_139, %c0_140] : memref<2x1x32xf32, #tpu.memory_space<vmem>>, vector<1x1x32xf32>
    %218 = vector.shape_cast %217 : vector<1x1x32xf32> to vector<1x32xf32>
    %c1_141 = arith.constant 1 : index
    %c0_142 = arith.constant 0 : index
    %c0_143 = arith.constant 0 : index
    %219 = vector.load %arg19[%c1_141, %c0_142, %c0_143] : memref<2x1x32xf32, #tpu.memory_space<vmem>>, vector<1x1x32xf32>
    %220 = vector.shape_cast %219 : vector<1x1x32xf32> to vector<1x32xf32>
    %221 = arith.addf %188, %1 : vector<16x32xf32>
    %cst_144 = arith.constant dense<0.000000e+00> : vector<16x32xf32>
    %222 = tpu.matmul %221, %190, %cst_144 {dimension_numbers = #tpu.dot_dimension_numbers<[1], [0], [0], [1], [0, 0, 1, 1], [], []>} : vector<16x32xf32>, vector<32x32xf32>, vector<16x32xf32> -> vector<16x32xf32>
    %223 = vector.broadcast %192 : vector<1x32xf32> to vector<16x32xf32>
    %224 = arith.addf %222, %223 : vector<16x32xf32>
    %cst_145 = arith.constant 0.353553385 : f32
    %225 = vector.broadcast %cst_145 : f32 to vector<16x32xf32>
    %226 = arith.mulf %224, %225 : vector<16x32xf32>
    %cst_146 = arith.constant dense<0.000000e+00> : vector<16x32xf32>
    %227 = tpu.matmul %221, %194, %cst_146 {dimension_numbers = #tpu.dot_dimension_numbers<[1], [0], [0], [1], [0, 0, 1, 1], [], []>} : vector<16x32xf32>, vector<32x32xf32>, vector<16x32xf32> -> vector<16x32xf32>
    %228 = vector.broadcast %196 : vector<1x32xf32> to vector<16x32xf32>
    %229 = arith.addf %227, %228 : vector<16x32xf32>
    %cst_147 = arith.constant dense<0.000000e+00> : vector<16x32xf32>
    %230 = tpu.matmul %188, %198, %cst_147 {dimension_numbers = #tpu.dot_dimension_numbers<[1], [0], [0], [1], [0, 0, 1, 1], [], []>} : vector<16x32xf32>, vector<32x32xf32>, vector<16x32xf32> -> vector<16x32xf32>
    %231 = vector.broadcast %200 : vector<1x32xf32> to vector<16x32xf32>
    %232 = arith.addf %230, %231 : vector<16x32xf32>
    %cst_148 = arith.constant 0.000000e+00 : f32
    %233 = vector.broadcast %cst_148 : f32 to vector<16x32xf32>
    %c0_149 = arith.constant 0 : index
    %c0_150 = arith.constant 0 : index
    %c0_151 = arith.constant 0 : index
    %234 = vector.load %arg3[%c0_149, %c0_150, %c0_151] : memref<4x1x32xf32, #tpu.memory_space<vmem>>, vector<1x1x32xf32>
    %235 = vector.shape_cast %234 : vector<1x1x32xf32> to vector<1x32xf32>
    %236 = vector.broadcast %235 : vector<1x32xf32> to vector<16x32xf32>
    %237 = arith.mulf %226, %236 : vector<16x32xf32>
    %cst_152 = arith.constant dense<0.000000e+00> : vector<16x16xf32>
    %238 = tpu.matmul %237, %229, %cst_152 {dimension_numbers = #tpu.dot_dimension_numbers<[1], [1], [0], [0], [0, 0, 1, 0], [], []>} : vector<16x32xf32>, vector<16x32xf32>, vector<16x16xf32> -> vector<16x16xf32>
    %239 = arith.addf %238, %2 : vector<16x16xf32>
    %cst_153 = arith.constant dense<0xFF800000> : vector<16xf32>
    %240 = vector.multi_reduction <maximumf>, %239, %cst_153 [1] : vector<16x16xf32> to vector<16xf32>
    %241 = vector.shape_cast %240 : vector<16xf32> to vector<16x1xf32>
    %242 = vector.broadcast %241 : vector<16x1xf32> to vector<16x16xf32>
    %243 = arith.subf %239, %242 : vector<16x16xf32>
    %244 = math.exp %243 : vector<16x16xf32>
    %cst_154 = arith.constant dense<0.000000e+00> : vector<16xf32>
    %245 = vector.multi_reduction <add>, %244, %cst_154 [1] : vector<16x16xf32> to vector<16xf32>
    %246 = vector.shape_cast %245 : vector<16xf32> to vector<16x1xf32>
    %247 = tpu.reciprocal %246 {approx = true} : vector<16x1xf32> -> vector<16x1xf32>
    %248 = vector.broadcast %247 : vector<16x1xf32> to vector<16x16xf32>
    %249 = arith.mulf %244, %248 : vector<16x16xf32>
    %250 = vector.broadcast %235 : vector<1x32xf32> to vector<16x32xf32>
    %251 = arith.mulf %232, %250 : vector<16x32xf32>
    %cst_155 = arith.constant dense<0.000000e+00> : vector<16x32xf32>
    %252 = tpu.matmul %249, %251, %cst_155 {dimension_numbers = #tpu.dot_dimension_numbers<[1], [0], [0], [1], [0, 0, 1, 1], [], []>} : vector<16x16xf32>, vector<16x32xf32>, vector<16x32xf32> -> vector<16x32xf32>
    %253 = arith.addf %233, %252 : vector<16x32xf32>
    %c1_156 = arith.constant 1 : index
    %c0_157 = arith.constant 0 : index
    %c0_158 = arith.constant 0 : index
    %254 = vector.load %arg3[%c1_156, %c0_157, %c0_158] : memref<4x1x32xf32, #tpu.memory_space<vmem>>, vector<1x1x32xf32>
    %255 = vector.shape_cast %254 : vector<1x1x32xf32> to vector<1x32xf32>
    %256 = vector.broadcast %255 : vector<1x32xf32> to vector<16x32xf32>
    %257 = arith.mulf %226, %256 : vector<16x32xf32>
    %cst_159 = arith.constant dense<0.000000e+00> : vector<16x16xf32>
    %258 = tpu.matmul %257, %229, %cst_159 {dimension_numbers = #tpu.dot_dimension_numbers<[1], [1], [0], [0], [0, 0, 1, 0], [], []>} : vector<16x32xf32>, vector<16x32xf32>, vector<16x16xf32> -> vector<16x16xf32>
    %259 = arith.addf %258, %2 : vector<16x16xf32>
    %cst_160 = arith.constant dense<0xFF800000> : vector<16xf32>
    %260 = vector.multi_reduction <maximumf>, %259, %cst_160 [1] : vector<16x16xf32> to vector<16xf32>
    %261 = vector.shape_cast %260 : vector<16xf32> to vector<16x1xf32>
    %262 = vector.broadcast %261 : vector<16x1xf32> to vector<16x16xf32>
    %263 = arith.subf %259, %262 : vector<16x16xf32>
    %264 = math.exp %263 : vector<16x16xf32>
    %cst_161 = arith.constant dense<0.000000e+00> : vector<16xf32>
    %265 = vector.multi_reduction <add>, %264, %cst_161 [1] : vector<16x16xf32> to vector<16xf32>
    %266 = vector.shape_cast %265 : vector<16xf32> to vector<16x1xf32>
    %267 = tpu.reciprocal %266 {approx = true} : vector<16x1xf32> -> vector<16x1xf32>
    %268 = vector.broadcast %267 : vector<16x1xf32> to vector<16x16xf32>
    %269 = arith.mulf %264, %268 : vector<16x16xf32>
    %270 = vector.broadcast %255 : vector<1x32xf32> to vector<16x32xf32>
    %271 = arith.mulf %232, %270 : vector<16x32xf32>
    %cst_162 = arith.constant dense<0.000000e+00> : vector<16x32xf32>
    %272 = tpu.matmul %269, %271, %cst_162 {dimension_numbers = #tpu.dot_dimension_numbers<[1], [0], [0], [1], [0, 0, 1, 1], [], []>} : vector<16x16xf32>, vector<16x32xf32>, vector<16x32xf32> -> vector<16x32xf32>
    %273 = arith.addf %253, %272 : vector<16x32xf32>
    %c2_163 = arith.constant 2 : index
    %c0_164 = arith.constant 0 : index
    %c0_165 = arith.constant 0 : index
    %274 = vector.load %arg3[%c2_163, %c0_164, %c0_165] : memref<4x1x32xf32, #tpu.memory_space<vmem>>, vector<1x1x32xf32>
    %275 = vector.shape_cast %274 : vector<1x1x32xf32> to vector<1x32xf32>
    %276 = vector.broadcast %275 : vector<1x32xf32> to vector<16x32xf32>
    %277 = arith.mulf %226, %276 : vector<16x32xf32>
    %cst_166 = arith.constant dense<0.000000e+00> : vector<16x16xf32>
    %278 = tpu.matmul %277, %229, %cst_166 {dimension_numbers = #tpu.dot_dimension_numbers<[1], [1], [0], [0], [0, 0, 1, 0], [], []>} : vector<16x32xf32>, vector<16x32xf32>, vector<16x16xf32> -> vector<16x16xf32>
    %279 = arith.addf %278, %2 : vector<16x16xf32>
    %cst_167 = arith.constant dense<0xFF800000> : vector<16xf32>
    %280 = vector.multi_reduction <maximumf>, %279, %cst_167 [1] : vector<16x16xf32> to vector<16xf32>
    %281 = vector.shape_cast %280 : vector<16xf32> to vector<16x1xf32>
    %282 = vector.broadcast %281 : vector<16x1xf32> to vector<16x16xf32>
    %283 = arith.subf %279, %282 : vector<16x16xf32>
    %284 = math.exp %283 : vector<16x16xf32>
    %cst_168 = arith.constant dense<0.000000e+00> : vector<16xf32>
    %285 = vector.multi_reduction <add>, %284, %cst_168 [1] : vector<16x16xf32> to vector<16xf32>
    %286 = vector.shape_cast %285 : vector<16xf32> to vector<16x1xf32>
    %287 = tpu.reciprocal %286 {approx = true} : vector<16x1xf32> -> vector<16x1xf32>
    %288 = vector.broadcast %287 : vector<16x1xf32> to vector<16x16xf32>
    %289 = arith.mulf %284, %288 : vector<16x16xf32>
    %290 = vector.broadcast %275 : vector<1x32xf32> to vector<16x32xf32>
    %291 = arith.mulf %232, %290 : vector<16x32xf32>
    %cst_169 = arith.constant dense<0.000000e+00> : vector<16x32xf32>
    %292 = tpu.matmul %289, %291, %cst_169 {dimension_numbers = #tpu.dot_dimension_numbers<[1], [0], [0], [1], [0, 0, 1, 1], [], []>} : vector<16x16xf32>, vector<16x32xf32>, vector<16x32xf32> -> vector<16x32xf32>
    %293 = arith.addf %273, %292 : vector<16x32xf32>
    %c3_170 = arith.constant 3 : index
    %c0_171 = arith.constant 0 : index
    %c0_172 = arith.constant 0 : index
    %294 = vector.load %arg3[%c3_170, %c0_171, %c0_172] : memref<4x1x32xf32, #tpu.memory_space<vmem>>, vector<1x1x32xf32>
    %295 = vector.shape_cast %294 : vector<1x1x32xf32> to vector<1x32xf32>
    %296 = vector.broadcast %295 : vector<1x32xf32> to vector<16x32xf32>
    %297 = arith.mulf %226, %296 : vector<16x32xf32>
    %cst_173 = arith.constant dense<0.000000e+00> : vector<16x16xf32>
    %298 = tpu.matmul %297, %229, %cst_173 {dimension_numbers = #tpu.dot_dimension_numbers<[1], [1], [0], [0], [0, 0, 1, 0], [], []>} : vector<16x32xf32>, vector<16x32xf32>, vector<16x16xf32> -> vector<16x16xf32>
    %299 = arith.addf %298, %2 : vector<16x16xf32>
    %cst_174 = arith.constant dense<0xFF800000> : vector<16xf32>
    %300 = vector.multi_reduction <maximumf>, %299, %cst_174 [1] : vector<16x16xf32> to vector<16xf32>
    %301 = vector.shape_cast %300 : vector<16xf32> to vector<16x1xf32>
    %302 = vector.broadcast %301 : vector<16x1xf32> to vector<16x16xf32>
    %303 = arith.subf %299, %302 : vector<16x16xf32>
    %304 = math.exp %303 : vector<16x16xf32>
    %cst_175 = arith.constant dense<0.000000e+00> : vector<16xf32>
    %305 = vector.multi_reduction <add>, %304, %cst_175 [1] : vector<16x16xf32> to vector<16xf32>
    %306 = vector.shape_cast %305 : vector<16xf32> to vector<16x1xf32>
    %307 = tpu.reciprocal %306 {approx = true} : vector<16x1xf32> -> vector<16x1xf32>
    %308 = vector.broadcast %307 : vector<16x1xf32> to vector<16x16xf32>
    %309 = arith.mulf %304, %308 : vector<16x16xf32>
    %310 = vector.broadcast %295 : vector<1x32xf32> to vector<16x32xf32>
    %311 = arith.mulf %232, %310 : vector<16x32xf32>
    %cst_176 = arith.constant dense<0.000000e+00> : vector<16x32xf32>
    %312 = tpu.matmul %309, %311, %cst_176 {dimension_numbers = #tpu.dot_dimension_numbers<[1], [0], [0], [1], [0, 0, 1, 1], [], []>} : vector<16x16xf32>, vector<16x32xf32>, vector<16x32xf32> -> vector<16x32xf32>
    %313 = arith.addf %293, %312 : vector<16x32xf32>
    %cst_177 = arith.constant dense<0.000000e+00> : vector<16x32xf32>
    %314 = tpu.matmul %313, %202, %cst_177 {dimension_numbers = #tpu.dot_dimension_numbers<[1], [0], [0], [1], [0, 0, 1, 1], [], []>} : vector<16x32xf32>, vector<32x32xf32>, vector<16x32xf32> -> vector<16x32xf32>
    %315 = vector.broadcast %204 : vector<1x32xf32> to vector<16x32xf32>
    %316 = arith.addf %314, %315 : vector<16x32xf32>
    %317 = arith.addf %188, %316 : vector<16x32xf32>
    %cst_178 = arith.constant dense<0.000000e+00> : vector<16xf32>
    %318 = vector.multi_reduction <add>, %317, %cst_178 [1] : vector<16x32xf32> to vector<16xf32>
    %319 = vector.shape_cast %318 : vector<16xf32> to vector<16x1xf32>
    %cst_179 = arith.constant 3.200000e+01 : f32
    %320 = vector.broadcast %cst_179 : f32 to vector<16x1xf32>
    %321 = arith.divf %319, %320 : vector<16x1xf32>
    %322 = vector.broadcast %321 : vector<16x1xf32> to vector<16x32xf32>
    %323 = arith.subf %317, %322 : vector<16x32xf32>
    %324 = vector.broadcast %321 : vector<16x1xf32> to vector<16x32xf32>
    %325 = arith.subf %317, %324 : vector<16x32xf32>
    %326 = arith.mulf %323, %325 : vector<16x32xf32>
    %cst_180 = arith.constant dense<0.000000e+00> : vector<16xf32>
    %327 = vector.multi_reduction <add>, %326, %cst_180 [1] : vector<16x32xf32> to vector<16xf32>
    %328 = vector.shape_cast %327 : vector<16xf32> to vector<16x1xf32>
    %cst_181 = arith.constant 3.200000e+01 : f32
    %329 = vector.broadcast %cst_181 : f32 to vector<16x1xf32>
    %330 = arith.divf %328, %329 : vector<16x1xf32>
    %331 = vector.broadcast %321 : vector<16x1xf32> to vector<16x32xf32>
    %332 = arith.subf %317, %331 : vector<16x32xf32>
    %cst_182 = arith.constant 9.99999974E-6 : f32
    %333 = vector.broadcast %cst_182 : f32 to vector<16x1xf32>
    %334 = arith.addf %330, %333 : vector<16x1xf32>
    %335 = math.rsqrt %334 : vector<16x1xf32>
    %336 = vector.broadcast %335 : vector<16x1xf32> to vector<16x32xf32>
    %337 = arith.mulf %332, %336 : vector<16x32xf32>
    %338 = vector.broadcast %206 : vector<1x32xf32> to vector<16x32xf32>
    %339 = arith.mulf %337, %338 : vector<16x32xf32>
    %340 = vector.broadcast %208 : vector<1x32xf32> to vector<16x32xf32>
    %341 = arith.addf %339, %340 : vector<16x32xf32>
    %cst_183 = arith.constant dense<0.000000e+00> : vector<16x64xf32>
    %342 = tpu.matmul %341, %210, %cst_183 {dimension_numbers = #tpu.dot_dimension_numbers<[1], [0], [0], [1], [0, 0, 1, 1], [], []>} : vector<16x32xf32>, vector<32x64xf32>, vector<16x64xf32> -> vector<16x64xf32>
    %343 = vector.broadcast %212 : vector<1x64xf32> to vector<16x64xf32>
    %344 = arith.addf %342, %343 : vector<16x64xf32>
    %cst_184 = arith.constant 0.000000e+00 : f32
    %345 = vector.broadcast %cst_184 : f32 to vector<16x64xf32>
    %346 = arith.maximumf %344, %345 : vector<16x64xf32>
    %cst_185 = arith.constant dense<0.000000e+00> : vector<16x32xf32>
    %347 = tpu.matmul %346, %214, %cst_185 {dimension_numbers = #tpu.dot_dimension_numbers<[1], [0], [0], [1], [0, 0, 1, 1], [], []>} : vector<16x64xf32>, vector<64x32xf32>, vector<16x32xf32> -> vector<16x32xf32>
    %348 = vector.broadcast %216 : vector<1x32xf32> to vector<16x32xf32>
    %349 = arith.addf %347, %348 : vector<16x32xf32>
    %350 = arith.addf %341, %349 : vector<16x32xf32>
    %cst_186 = arith.constant dense<0.000000e+00> : vector<16xf32>
    %351 = vector.multi_reduction <add>, %350, %cst_186 [1] : vector<16x32xf32> to vector<16xf32>
    %352 = vector.shape_cast %351 : vector<16xf32> to vector<16x1xf32>
    %cst_187 = arith.constant 3.200000e+01 : f32
    %353 = vector.broadcast %cst_187 : f32 to vector<16x1xf32>
    %354 = arith.divf %352, %353 : vector<16x1xf32>
    %355 = vector.broadcast %354 : vector<16x1xf32> to vector<16x32xf32>
    %356 = arith.subf %350, %355 : vector<16x32xf32>
    %357 = vector.broadcast %354 : vector<16x1xf32> to vector<16x32xf32>
    %358 = arith.subf %350, %357 : vector<16x32xf32>
    %359 = arith.mulf %356, %358 : vector<16x32xf32>
    %cst_188 = arith.constant dense<0.000000e+00> : vector<16xf32>
    %360 = vector.multi_reduction <add>, %359, %cst_188 [1] : vector<16x32xf32> to vector<16xf32>
    %361 = vector.shape_cast %360 : vector<16xf32> to vector<16x1xf32>
    %cst_189 = arith.constant 3.200000e+01 : f32
    %362 = vector.broadcast %cst_189 : f32 to vector<16x1xf32>
    %363 = arith.divf %361, %362 : vector<16x1xf32>
    %364 = vector.broadcast %354 : vector<16x1xf32> to vector<16x32xf32>
    %365 = arith.subf %350, %364 : vector<16x32xf32>
    %cst_190 = arith.constant 9.99999974E-6 : f32
    %366 = vector.broadcast %cst_190 : f32 to vector<16x1xf32>
    %367 = arith.addf %363, %366 : vector<16x1xf32>
    %368 = math.rsqrt %367 : vector<16x1xf32>
    %369 = vector.broadcast %368 : vector<16x1xf32> to vector<16x32xf32>
    %370 = arith.mulf %365, %369 : vector<16x32xf32>
    %371 = vector.broadcast %218 : vector<1x32xf32> to vector<16x32xf32>
    %372 = arith.mulf %370, %371 : vector<16x32xf32>
    %373 = vector.broadcast %220 : vector<1x32xf32> to vector<16x32xf32>
    %374 = arith.addf %372, %373 : vector<16x32xf32>
    %c0_191 = arith.constant 0 : index
    %c0_192 = arith.constant 0 : index
    %375 = vector.load %arg20[%c0_191, %c0_192] : memref<16x32xf32, #tpu.memory_space<vmem>>, vector<16x32xf32>
    tpu.vector_store %arg20[%c0_191, %c0_192], %374 {strides = array<i32>} : memref<16x32xf32, #tpu.memory_space<vmem>>, vector<16x32xf32>,
    return
  }
}

</mosaic_0001>

<bundles_post_ra>
// kernel: transformer_encoder_forward.1
= control target key start
LH: loop header
LB: loop body
LE: loop exit
PB: predicated region body
PF: predicated region fallthrough
CT: control target
= control target key end

     0   :  { %s4909_s0 = inlined_call_operand.vmem [shape: f32[16,32], index: 0, kind: input, shape index: {}]   ;;  %s4910_s1 = inlined_call_operand.hbm [shape: f32[16,32], index: 1, kind: input, shape index: {}]   ;;  %s4911_s2 = inlined_call_operand.vmem [shape: f32[16,16], index: 2, kind: input, shape index: {}]   ;;  %s4912_s3 = inlined_call_operand.vmem [shape: f32[4,1,32], index: 3, kind: input, shape index: {}]   ;;  %s4913_s4 = inlined_call_operand.vmem [shape: f32[2,32,32], index: 4, kind: input, shape index: {}]   ;;  %s4914_s5 = inlined_call_operand.vmem [shape: f32[2,1,32], index: 5, kind: input, shape index: {}]   ;;  %s4915_s6 = inlined_call_operand.vmem [shape: f32[2,32,32], index: 6, kind: input, shape index: {}]   ;;  %s4916_s7 = inlined_call_operand.vmem [shape: f32[2,1,32], index: 7, kind: input, shape index: {}]   ;;  %s4917_s8 = inlined_call_operand.vmem [shape: f32[2,32,32], index: 8, kind: input, shape index: {}]   ;;  %s4918_s9 = inlined_call_operand.vmem [shape: f32[2,1,32], index: 9, kind: input, shape index: {}]   ;;  %s4919_s10 = inlined_call_operand.hbm [shape: f32[2,32,32], index: 10, kind: input, shape index: {}]   ;;  %s4920_s11 = inlined_call_operand.hbm [shape: f32[2,1,32], index: 11, kind: input, shape index: {}]   ;;  %s4921_s12 = inlined_call_operand.hbm [shape: f32[2,1,32], index: 12, kind: input, shape index: {}]   ;;  %s4922_s13 = inlined_call_operand.hbm [shape: f32[2,1,32], index: 13, kind: input, shape index: {}]   ;;  %s4923_s14 = inlined_call_operand.hbm [shape: f32[2,32,64], index: 14, kind: input, shape index: {}]   ;;  %s4924_s15 = inlined_call_operand.hbm [shape: f32[2,1,64], index: 15, kind: input, shape index: {}]   ;;  %s4925_s16 = inlined_call_operand.vmem [shape: f32[2,64,32], index: 16, kind: input, shape index: {}]   ;;  %s4926_s17 = inlined_call_operand.hbm [shape: f32[2,1,32], index: 17, kind: input, shape index: {}]   ;;  %s4927_s18 = inlined_call_operand.hbm [shape: f32[2,1,32], index: 18, kind: input, shape index: {}]   ;;  %s4928_s19 = inlined_call_operand.hbm [shape: f32[2,1,32], index: 19, kind: input, shape index: {}]   ;;  %s4929_s20 = inlined_call_operand.hbm [shape: f32[16,32], index: 20, kind: output, shape index: {}]  }
   0x1   :  { %4936 = sst [smem:[#allocation27_spill]] %s4909_s0 }
   0x2   :  { %4937 = sst [smem:[#allocation28_spill]] %s4910_s1 }
   0x3   :  { %4938 = sst [smem:[#allocation29_spill]] %s4911_s2 }
   0x4   :  { %4939 = sst [smem:[#allocation30_spill]] %s4912_s3 }
   0x5   :  { %4940 = sst [smem:[#allocation31_spill]] %s4913_s4 }
   0x6   :  { %4941 = sst [smem:[#allocation32_spill]] %s4929_s20 }
   0x7   :  { %25 = vsyncpa [#allocation3], 0 }
   0x8   :  { %26 = vsyncpa [#allocation6], 0 }
   0x9   :  { %27 = vsyncpa [#allocation9], 0 }
   0xa   :  { %28 = vsyncpa [#allocation12], 0 }
   0xb   :  { %29 = vsyncpa [#allocation15], 0 }
   0xc   :  { %30 = vsyncpa [#allocation18], 0 }
   0xd   :  { %31 = vsyncpa [#allocation4], 0  ;;  %s4184_s1 = smov [#allocation5]   ;;  %s3928_s2 = scalar_lea.hbm %s4919_s10, 1024 }
   0xe   :  { %s67_s22 = sshll.u32 %s4184_s1, 4  ;;  %p3929_p0 = scmp.ne.s32.totalorder %s4919_s10, %s3928_s2  ;;  %s68_s22 = int_to_ptr.vmem [resolvable:$true] %s67_s22 }
   0xf   :  { %p3932_p1 = scmp.lt.u32.totalorder %s3928_s2, %s4919_s10 }
  0x11   :  { %p3934_p2 = pnand %p3932_p1, %p3929_p0 }
  0x13   :  { %3937 = shalt.err (!%p3934_p2)
}
  0x14   :  { %s3938_s28 = scalar_lea.vmem %s68_s22, 1024  ;;  %p3943_p4 = scmp.lt.s32.totalorder %s68_s22, %s68_s22 }
  0x15   :  { %p3939_p3 = scmp.ne.s32.totalorder %s68_s22, %s3938_s28  ;;  %p3944_p5 = scmp.lt.s32.totalorder %s3938_s28, %s3938_s28 }
  0x17   :  { %p3945_p6 = por %p3944_p5, %p3943_p4 }
  0x19   :  { %p3946_p7 = pnand %p3945_p6, %p3939_p3 }
  0x1b   :  { %3949 = shalt.err (!%p3946_p7)
}
  0x1c   :  { %s4185_s4 = smov 128   ;;  %s4186_s29 = smov 8  }
  0x1d   :  { %73 = dma.hbm_to_vmem [thread:$0]  %s4919_s10, 1024, %s68_s22, [#allocation6], %s4185_s4, %s4185_s4, %s4186_s29  }
  0x1e   :  { %s4187_s21 = smov [#allocation8]   ;;  %s4188_s23 = smov [#allocation11]  }
  0x1f   :  { %s91_s1 = sshll.u32 %s4187_s21, 4  ;;  %s115_s24 = sshll.u32 %s4188_s23, 4  ;;  %s92_s1 = int_to_ptr.vmem [resolvable:$true] %s91_s1  ;;  %s116_s24 = int_to_ptr.vmem [resolvable:$true] %s115_s24 }
  0x20   :  { %s3950_s3 = scalar_lea.hbm %s4921_s12, 32 }
  0x21   :  { %p3951_p8 = scmp.ne.s32.totalorder %s4921_s12, %s3950_s3  ;;  %p3954_p9 = scmp.lt.u32.totalorder %s3950_s3, %s4921_s12 }
  0x23   :  { %p3956_p10 = pnand %p3954_p9, %p3951_p8 }
  0x25   :  { %3959 = shalt.err (!%p3956_p10)
}
  0x26   :  { %s3960_s10 = scalar_lea.vmem %s92_s1, 32  ;;  %p3965_p12 = scmp.lt.s32.totalorder %s92_s1, %s92_s1 }
  0x27   :  { %p3961_p11 = scmp.ne.s32.totalorder %s92_s1, %s3960_s10  ;;  %p3966_p13 = scmp.lt.s32.totalorder %s3960_s10, %s3960_s10 }
  0x29   :  { %p3967_p0 = por %p3966_p13, %p3965_p12 }
  0x2b   :  { %p3968_p1 = pnand %p3967_p0, %p3961_p11 }
  0x2d   :  { %3971 = shalt.err (!%p3968_p1)
}
  0x2e   :  { %s4189_s22 = smov 16   ;;  %s4190_s30 = smov 1  }
  0x2f   :  { %97 = dma.hbm_to_vmem [thread:$0]  %s4921_s12, 32, %s92_s1, [#allocation9], %s4189_s22, %s4189_s22, %s4190_s30  }
  0x30   :  { %s3972_s2 = scalar_lea.hbm %s4923_s14, 1024 }
  0x31   :  { %p3973_p2 = scmp.ne.s32.totalorder %s4923_s14, %s3972_s2  ;;  %p3976_p3 = scmp.lt.u32.totalorder %s3972_s2, %s4923_s14 }
  0x33   :  { %p3978_p4 = pnand %p3976_p3, %p3973_p2 }
  0x35   :  { %3981 = shalt.err (!%p3978_p4)
}
  0x36   :  { %s3982_s28 = scalar_lea.vmem %s116_s24, 1024  ;;  %p3987_p6 = scmp.lt.s32.totalorder %s116_s24, %s116_s24 }
  0x37   :  { %p3983_p5 = scmp.ne.s32.totalorder %s116_s24, %s3982_s28  ;;  %p3988_p7 = scmp.lt.s32.totalorder %s3982_s28, %s3982_s28 }
  0x39   :  { %p3989_p8 = por %p3988_p7, %p3987_p6 }
  0x3b   :  { %p3990_p9 = pnand %p3989_p8, %p3983_p5 }
  0x3d   :  { %3993 = shalt.err (!%p3990_p9)
}
  0x3e   :  { %121 = dma.hbm_to_vmem [thread:$0]  %s4923_s14, 1024, %s116_s24, [#allocation12], %s4185_s4, %s4185_s4, %s4186_s29  }
  0x3f   :  { %s4191_s10 = smov [#allocation14]   ;;  %s4192_s21 = smov [#allocation2]  }
  0x40   :  { %s141_s0 = sshll.u32 %s4191_s10, 4  ;;  %s39_s20 = sshll.u32 %s4192_s21, 4  ;;  %s142_s0 = int_to_ptr.vmem [resolvable:$true] %s141_s0  ;;  %s40_s20 = int_to_ptr.vmem [resolvable:$true] %s39_s20 }
  0x41   :  { %s3994_s25 = scalar_lea.hbm %s4926_s17, 32 }
  0x42   :  { %p3995_p10 = scmp.ne.s32.totalorder %s4926_s17, %s3994_s25  ;;  %p3998_p11 = scmp.lt.u32.totalorder %s3994_s25, %s4926_s17 }
  0x44   :  { %p4000_p12 = pnand %p3998_p11, %p3995_p10 }
  0x46   :  { %4003 = shalt.err (!%p4000_p12)
}
  0x47   :  { %s4004_s14 = scalar_lea.vmem %s142_s0, 32  ;;  %p4009_p0 = scmp.lt.s32.totalorder %s142_s0, %s142_s0 }
  0x48   :  { %p4005_p13 = scmp.ne.s32.totalorder %s142_s0, %s4004_s14  ;;  %p4010_p1 = scmp.lt.s32.totalorder %s4004_s14, %s4004_s14 }
  0x4a   :  { %p4011_p2 = por %p4010_p1, %p4009_p0 }
  0x4c   :  { %p4012_p3 = pnand %p4011_p2, %p4005_p13 }
  0x4e   :  { %4015 = shalt.err (!%p4012_p3)
}
  0x4f   :  { %147 = dma.hbm_to_vmem [thread:$0]  %s4926_s17, 32, %s142_s0, [#allocation15], %s4189_s22, %s4189_s22, %s4190_s30  }
  0x50   :  { %s4942_s21 = sld [smem:[#allocation28_spill]] }
  0x56   :  { %s4016_s23 = scalar_lea.hbm %s4942_s21, 256 }
  0x57   :  { %p4017_p4 = scmp.ne.s32.totalorder %s4942_s21, %s4016_s23  ;;  %p4020_p5 = scmp.lt.u32.totalorder %s4016_s23, %s4942_s21 }
  0x59   :  { %p4022_p6 = pnand %p4020_p5, %p4017_p4 }
  0x5b   :  { %4025 = shalt.err (!%p4022_p6)
}
  0x5c   :  { %s4026_s27 = scalar_lea.vmem %s40_s20, 256  ;;  %p4031_p8 = scmp.lt.s32.totalorder %s40_s20, %s40_s20 }
  0x5d   :  { %p4027_p7 = scmp.ne.s32.totalorder %s40_s20, %s4026_s27  ;;  %p4032_p9 = scmp.lt.s32.totalorder %s4026_s27, %s4026_s27 }
  0x5f   :  { %p4033_p10 = por %p4032_p9, %p4031_p8 }
  0x61   :  { %p4034_p11 = pnand %p4033_p10, %p4027_p7 }
  0x63   :  { %4037 = shalt.err (!%p4034_p11)
}
  0x64   :  { %45 = dma.hbm_to_vmem [thread:$0]  %s4942_s21, 256, %s40_s20, [#allocation3], %s4185_s4, %s4185_s4, %s4186_s29  }
  0x65   :  { %s4193_s28 = smov [#allocation7]   ;;  %s4194_s24 = smov [#allocation10]  }
  0x66   :  { %s79_s14 = sshll.u32 %s4193_s28, 4  ;;  %s103_s12 = sshll.u32 %s4194_s24, 4  ;;  %s80_s14 = int_to_ptr.vmem [resolvable:$true] %s79_s14  ;;  %s104_s12 = int_to_ptr.vmem [resolvable:$true] %s103_s12 }
  0x67   :  { %s4038_s23 = scalar_lea.hbm %s4920_s11, 32 }
  0x68   :  { %p4039_p12 = scmp.ne.s32.totalorder %s4920_s11, %s4038_s23  ;;  %p4042_p13 = scmp.lt.u32.totalorder %s4038_s23, %s4920_s11 }
  0x6a   :  { %p4044_p0 = pnand %p4042_p13, %p4039_p12 }
  0x6c   :  { %4047 = shalt.err (!%p4044_p0)
}
  0x6d   :  { %s4048_s20 = scalar_lea.vmem %s80_s14, 32  ;;  %p4053_p2 = scmp.lt.s32.totalorder %s80_s14, %s80_s14 }
  0x6e   :  { %p4049_p1 = scmp.ne.s32.totalorder %s80_s14, %s4048_s20  ;;  %p4054_p3 = scmp.lt.s32.totalorder %s4048_s20, %s4048_s20 }
  0x70   :  { %p4055_p4 = por %p4054_p3, %p4053_p2 }
  0x72   :  { %p4056_p5 = pnand %p4055_p4, %p4049_p1 }
  0x74   :  { %4059 = shalt.err (!%p4056_p5)
}
  0x75   :  { %85 = dma.hbm_to_vmem [thread:$0]  %s4920_s11, 32, %s80_s14, [#allocation6], %s4189_s22, %s4189_s22, %s4190_s30  }
  0x76   :  { %s4060_s28 = scalar_lea.hbm %s4922_s13, 32 }
  0x77   :  { %p4061_p6 = scmp.ne.s32.totalorder %s4922_s13, %s4060_s28  ;;  %p4064_p7 = scmp.lt.u32.totalorder %s4060_s28, %s4922_s13 }
  0x79   :  { %p4066_p8 = pnand %p4064_p7, %p4061_p6 }
  0x7b   :  { %4069 = shalt.err (!%p4066_p8)
}
  0x7c   :  { %s4070_s2 = scalar_lea.vmem %s104_s12, 32  ;;  %p4075_p10 = scmp.lt.s32.totalorder %s104_s12, %s104_s12 }
  0x7d   :  { %p4071_p9 = scmp.ne.s32.totalorder %s104_s12, %s4070_s2  ;;  %p4076_p11 = scmp.lt.s32.totalorder %s4070_s2, %s4070_s2 }
  0x7f   :  { %p4077_p12 = por %p4076_p11, %p4075_p10 }
  0x81   :  { %p4078_p13 = pnand %p4077_p12, %p4071_p9 }
  0x83   :  { %4081 = shalt.err (!%p4078_p13)
}
  0x84   :  { %109 = dma.hbm_to_vmem [thread:$0]  %s4922_s13, 32, %s104_s12, [#allocation9], %s4189_s22, %s4189_s22, %s4190_s30  }
  0x85   :  { %s4195_s25 = smov [#allocation13]   ;;  %s4196_s26 = smov [#allocation16]  }
  0x86   :  { %s127_s3 = sshll.u32 %s4195_s25, 4  ;;  %s153_s20 = sshll.u32 %s4196_s26, 4  ;;  %s128_s3 = int_to_ptr.vmem [resolvable:$true] %s127_s3  ;;  %s154_s20 = int_to_ptr.vmem [resolvable:$true] %s153_s20 }
  0x87   :  { %s4082_s17 = scalar_lea.hbm %s4924_s15, 32 }
  0x88   :  { %p4083_p0 = scmp.ne.s32.totalorder %s4924_s15, %s4082_s17  ;;  %p4086_p1 = scmp.lt.u32.totalorder %s4082_s17, %s4924_s15 }
  0x8a   :  { %p4088_p2 = pnand %p4086_p1, %p4083_p0 }
  0x8c   :  { %4091 = shalt.err (!%p4088_p2)
}
  0x8d   :  { %s4092_s13 = scalar_lea.vmem %s128_s3, 32  ;;  %p4097_p4 = scmp.lt.s32.totalorder %s128_s3, %s128_s3 }
  0x8e   :  { %p4093_p3 = scmp.ne.s32.totalorder %s128_s3, %s4092_s13  ;;  %p4098_p5 = scmp.lt.s32.totalorder %s4092_s13, %s4092_s13 }
  0x90   :  { %p4099_p6 = por %p4098_p5, %p4097_p4 }
  0x92   :  { %p4100_p7 = pnand %p4099_p6, %p4093_p3 }
  0x94   :  { %4103 = shalt.err (!%p4100_p7)
}
  0x95   :  { %133 = dma.hbm_to_vmem [thread:$0]  %s4924_s15, 32, %s128_s3, [#allocation12], %s4189_s22, %s4189_s22, %s4190_s30  }
  0x96   :  { %s4104_s11 = scalar_lea.hbm %s4927_s18, 32 }
  0x97   :  { %p4105_p8 = scmp.ne.s32.totalorder %s4927_s18, %s4104_s11  ;;  %p4108_p9 = scmp.lt.u32.totalorder %s4104_s11, %s4927_s18 }
  0x99   :  { %p4110_p10 = pnand %p4108_p9, %p4105_p8 }
  0x9b   :  { %4113 = shalt.err (!%p4110_p10)
}
  0x9c   :  { %s4114_s27 = scalar_lea.vmem %s154_s20, 32  ;;  %p4119_p12 = scmp.lt.s32.totalorder %s154_s20, %s154_s20 }
  0x9d   :  { %p4115_p11 = scmp.ne.s32.totalorder %s154_s20, %s4114_s27  ;;  %p4120_p13 = scmp.lt.s32.totalorder %s4114_s27, %s4114_s27 }
  0x9f   :  { %p4121_p0 = por %p4120_p13, %p4119_p12 }
  0xa1   :  { %p4122_p1 = pnand %p4121_p0, %p4115_p11 }
  0xa3   :  { %4125 = shalt.err (!%p4122_p1)
}
  0xa4   :  { %159 = dma.hbm_to_vmem [thread:$0]  %s4927_s18, 32, %s154_s20, [#allocation15], %s4189_s22, %s4189_s22, %s4190_s30  }
  0xa5   :  { %s4197_s17 = smov [#allocation17]   ;;  %s4126_s1 = scalar_lea.hbm %s4928_s19, 32 }
  0xa6   :  { %s165_s0 = sshll.u32 %s4197_s17, 4  ;;  %p4127_p2 = scmp.ne.s32.totalorder %s4928_s19, %s4126_s1  ;;  %s166_s0 = int_to_ptr.vmem [resolvable:$true] %s165_s0 }
  0xa7   :  { %p4130_p3 = scmp.lt.u32.totalorder %s4126_s1, %s4928_s19 }
  0xa9   :  { %p4132_p4 = pnand %p4130_p3, %p4127_p2 }
  0xab   :  { %4135 = shalt.err (!%p4132_p4)
}
  0xac   :  { %s4136_s2 = scalar_lea.vmem %s166_s0, 32  ;;  %p4141_p6 = scmp.lt.s32.totalorder %s166_s0, %s166_s0 }
  0xad   :  { %p4137_p5 = scmp.ne.s32.totalorder %s166_s0, %s4136_s2  ;;  %p4142_p7 = scmp.lt.s32.totalorder %s4136_s2, %s4136_s2 }
  0xaf   :  { %p4143_p8 = por %p4142_p7, %p4141_p6 }
  0xb1   :  { %p4144_p9 = pnand %p4143_p8, %p4137_p5 }
  0xb3   :  { %4147 = shalt.err (!%p4144_p9)
}
  0xb4   :  { %171 = dma.hbm_to_vmem [thread:$0]  %s4928_s19, 32, %s166_s0, [#allocation18], %s4189_s22, %s4189_s22, %s4190_s30  }
  0xb5   :  { %4170 = dma.done.wait [#allocation3], 256  }
  0xb6   :  { %4171 = vsyncadd [#allocation3], 4294967040 }
  0xb7   :  { %4172 = dma.done.wait [#allocation6], 1056  }
  0xb8   :  { %4173 = vsyncadd [#allocation6], 4294966240 }
  0xb9   :  { %4174 = dma.done.wait [#allocation9], 64  }
  0xba   :  { %4175 = vsyncadd [#allocation9], 4294967232 }
  0xbb   :  { %4176 = dma.done.wait [#allocation12], 1056  }
  0xbc   :  { %4177 = vsyncadd [#allocation12], 4294966240 }
  0xbd   :  { %4178 = dma.done.wait [#allocation15], 64  }
  0xbe   :  { %4179 = vsyncadd [#allocation15], 4294967232 }
  0xbf   :  { %4180 = dma.done.wait [#allocation18], 32  }
  0xc0   :  { %4181 = vsyncadd [#allocation18], 4294967264  ;;  %s4943_s25 = sld [smem:[#allocation31_spill]]  ;;  %s4944_s17 = sld [smem:[#allocation27_spill]]  ;;  %v4471_v6 = vld [vmem:[#allocation2] sm:$0xff]  ;;  %vm254_vm0 = vcmask 261120  }
  0xc1   :  { %v213_v9 = vld [vmem:[%s4915_s6] sm:$0xff]  ;;  %v214_v11 = vld [vmem:[%s4915_s6 + $0x8] sm:$0xff]  ;;  %v215_v17 = vld [vmem:[%s4915_s6 + $0x10] sm:$0xff]  ;;  %s4945_s0 = sld [smem:[#allocation30_spill]]  ;;  %s4948_s26 = sld [smem:[#allocation29_spill]]  ;;  %vm602_vm2 = vcmask 130048  }
  0xc2   :  { %v4489_v12 = vld [vmem:[#allocation2 + $0x8] sm:$0xff]  ;;  %v218_v13 = vld [vmem:[%s4917_s8] sm:$0xff]  ;;  %v3637_v15 = vpack.c.bf16 %v214_v11, %v213_v9  ;;  %v216_v18 = vld [vmem:[%s4915_s6 + $0x18] sm:$0xff]  ;;  %vm1527_vm3 = vcmask 523264  }
  0xc3   :  { %v219_v14 = vld [vmem:[%s4917_s8 + $0x8] sm:$0xff]  ;;  %v3641_v20 = vpack.c.bf16 %v216_v18, %v215_v17  ;;  %v220_v21 = vld [vmem:[%s4917_s8 + $0x10] sm:$0xff]  ;;  %v221_v22 = vld [vmem:[%s4917_s8 + $0x18] sm:$0xff] }
  0xc4   :  { %v3645_v16 = vpack.c.bf16 %v219_v14, %v218_v13  ;;  %v3649_v23 = vpack.c.bf16 %v221_v22, %v220_v21  ;;  %v3103_v24 = vld [vmem:[%s4914_s5] ss:$0 sm:$0xff]  ;;  %vm4542_vm1 = vmpackc.low %vm254_vm0, %vm254_vm0 }
  0xc5   :  { %v3106_v31 = vld [vmem:[%s4916_s7] ss:$0 sm:$0xff] }
  0xc6   :  { %v208_v0 = vld [vmem:[%s4943_s25] sm:$0xff]  ;;  %v209_v1 = vld [vmem:[%s4943_s25 + $0x8] sm:$0xff]  ;;  %v210_v2 = vld [vmem:[%s4943_s25 + $0x10] sm:$0xff]  ;;  %3646 = vmatprep.subr.bf16.mxu0 %v3645_v16 }
  0xc7   :  { %v3629_v3 = vpack.c.bf16 %v209_v1, %v208_v0  ;;  %v211_v4 = vld [vmem:[%s4943_s25 + $0x18] sm:$0xff]  ;;  %v4469_v5 = vld [vmem:[%s4944_s17] sm:$0xff]  ;;  %v4483_v10 = vld [vmem:[%s4944_s17 + $0x8] sm:$0xff]  ;;  %3648 = vmatpush3.bf16.msra.mxu0 %v3645_v16 }
  0xc8   :  { %v3633_v7 = vpack.c.bf16 %v211_v4, %v210_v2  ;;  %v246_v8 = vadd.f32 %v4471_v6, %v4469_v5  ;;  %3399 = vmatprep.mubr.msk.f32.mxu0 %vm254_vm0, %v4469_v5  ;;  %v247_v19 = vadd.f32 %v4489_v12, %v4483_v10  ;;  %3650 = vmatprep.subr.bf16.mxu0 %v3649_v23  ;;  %v4522_v28 = vld [vmem:[%s4945_s0] ss:$0 sm:$0xff]  ;;  %v4527_v29 = vld [vmem:[%s4945_s0 + $0x1] ss:$0 sm:$0xff]  ;;  %v4568_v42 = vld [vmem:[%s4945_s0 + $0x2] ss:$0 sm:$0xff] }
  0xc9   :  { %3630 = vmatprep.subr.bf16.mxu1 %v3629_v3  ;;  %v3109_v47 = vld [vmem:[%s4918_s9] ss:$0 sm:$0xff]  ;;  %v4595_v57 = vld [vmem:[%s4945_s0 + $0x3] ss:$0 sm:$0xff]  ;;  %v4616_v4 = vld [vmem:[%s4948_s26 + $0x8] sm:$0xff] }
  0xca   :  { %3632 = vmatpush3.bf16.msra.mxu1 %v3629_v3  ;;  %3377 = vmatprep.mubr.msk.f32.mxu1 %vm254_vm0, %v246_v8  ;;  %v4611_v1 = vld [vmem:[%s4948_s26] sm:$0xff] }
  0xcb   :  { %3634 = vmatprep.subr.bf16.mxu1 %v3633_v7  ;;  %3652 = vmatpush3.bf16.msra.mxu0 %v3649_v23 }
  0xce   :  { %3636 = vmatpush3.bf16.msra.mxu1 %v3633_v7  ;;  %3400 = vmatmul.mubr.msk.f32.vlgmr.msra.gmra.mrb[0].mxu0 %vm254_vm0, %v4483_v10 }
  0xcf   :  { %3638 = vmatprep.subr.bf16.mxu1 %v3637_v15 }
  0xd1   :  { %3378 = vmatmul.mubr.msk.f32.vlgmr.msra.gmra.mrb[0].mxu1 %vm254_vm0, %v247_v19 }
  0xd2   :  { %3640 = vmatpush3.bf16.msra.mxu1 %v3637_v15  ;;  %3388 = vmatprep.mubr.msk.f32.mxu1 %vm254_vm0, %v246_v8 }
  0xd3   :  { %3642 = vmatprep.subr.bf16.mxu1 %v3641_v20 }
  0xd6   :  { %3644 = vmatpush3.bf16.msra.mxu1 %v3641_v20 }
  0xd9   :  { %3389 = vmatmul.mubr.msk.f32.vlgmr.msra.gmra.mrb[2].mxu1 %vm254_vm0, %v247_v19 }
 0x1a1   :  { %v3401_v48 = vpop.f32.mrb[0].mxu0 }
 0x1a2   :  { %v503_v49 = vadd.f32 %v3401_v48, %v3109_v47  ;;  %v497_v50 = vpop.f32.mrb[1].mxu0 }
 0x1a3   :  { %v498_v51 = vadd.f32 %v3109_v47, %v497_v50 }
 0x1a4   :  { %v3379_v25 = vpop.f32.mrb[0].mxu1  ;;  %v741_v52 = vmul.f32 %v4527_v29, %v503_v49  ;;  %v626_v56 = vmul.f32 %v4522_v28, %v503_v49  ;;  %v1018_v60 = vmul.f32 %v4568_v42, %v503_v49  ;;  %v1216_v62 = vmul.f32 %v4595_v57, %v503_v49 }
 0x1a5   :  { %v327_v26 = vpop.f32.mrb[1].mxu1  ;;  %v333_v39 = vadd.f32 %v3379_v25, %v3103_v24  ;;  %v740_v53 = vmul.f32 %v4527_v29, %v498_v51  ;;  %v625_v55 = vmul.f32 %v4522_v28, %v498_v51  ;;  %v1017_v59 = vmul.f32 %v4568_v42, %v498_v51 }
 0x1a6   :  { %v328_v27 = vadd.f32 %v3103_v24, %v327_v26  ;;  %v1215_v61 = vmul.f32 %v4595_v57, %v498_v51 }
 0x1a7   :  { %v4560_v41 = vmul.f32 0.35355338, %v333_v39  ;;  %v3665_v54 = vpack.c.bf16 %v741_v52, %v740_v53  ;;  %v4597_v58 = vpack.c.bf16 %v626_v56, %v625_v55  ;;  %v4604_v63 = vpack.c.bf16 %v1018_v60, %v1017_v59 }
 0x1a8   :  { %v4529_v30 = vmul.f32 0.35355338, %v328_v27  ;;  %v4606_v0 = vpack.c.bf16 %v1216_v62, %v1215_v61 }
 0x1a9   :  { %v514_v43 = vmul.f32 %v4522_v28, %v4560_v41  ;;  %v636_v44 = vmul.f32 %v4527_v29, %v4560_v41  ;;  %v913_v46 = vmul.f32 %v4568_v42, %v4560_v41 }
 0x1aa   :  { %v513_v32 = vmul.f32 %v4522_v28, %v4529_v30  ;;  %v635_v33 = vmul.f32 %v4527_v29, %v4529_v30  ;;  %v912_v45 = vmul.f32 %v4568_v42, %v4529_v30 }
 0x1ac   :  { %v3390_v34 = vpop.f32.mrb[2].mxu1  ;;  %3406 = vmatprep.mubr.msk.f32.mxu1 %vm254_vm0, %v513_v32  ;;  %3413 = vmatprep.mubr.msk.f32.mxu0 %vm254_vm0, %v635_v33 }
 0x1ad   :  { %v416_v35 = vadd.f32 %v3390_v34, %v3106_v31  ;;  %v410_v36 = vpop.f32.mrb[3].mxu1 }
 0x1ae   :  { %v411_v37 = vadd.f32 %v3106_v31, %v410_v36 }
 0x1b0   :  { %v4546_v40 = vpack.c.bf16 %v416_v35, %v411_v37 }
 0x1b2   :  { %3655 = vmatprep.subr.msk.bf16.mxu1 %vm4542_vm1, %v4546_v40  ;;  %3661 = vmatprep.subr.msk.bf16.mxu0 %vm4542_vm1, %v4546_v40 }
 0x1b3   :  { %3658 = vmatpush3.bf16.xpose.msk.msra.mxu1 %vm4542_vm1, %v4546_v40  ;;  %3664 = vmatpush3.bf16.xpose.msk.msra.mxu0 %vm4542_vm1, %v4546_v40 }
 0x1b4   :  { %3675 = vmatprep.subr.msk.bf16.mxu0 %vm4542_vm1, %v4546_v40  ;;  %3666 = vmatprep.subr.bf16.mxu1 %v3665_v54 }
 0x1ba   :  { %3407 = vmatmul.mubr.msk.f32.vlgmr.msra.gmra.mrb[4].mxu1 %vm254_vm0, %v514_v43  ;;  %3414 = vmatmul.mubr.msk.f32.vlgmr.msra.gmra.mrb[2].mxu0 %vm254_vm0, %v636_v44 }
 0x1bb   :  { %3678 = vmatpush3.bf16.xpose.msk.msra.mxu0 %vm4542_vm1, %v4546_v40  ;;  %3434 = vmatprep.mubr.msk.f32.mxu0 %vm254_vm0, %v912_v45 }
 0x1bc   :  { %3668 = vmatpush3.bf16.msra.mxu1 %v3665_v54 }
 0x1bd   :  { %3670 = vmatprep.subr.bf16.mxu1 %v4597_v58 }
 0x1c2   :  { %3435 = vmatmul.mubr.msk.f32.vlgmr.msra.gmra.mrb[4].mxu0 %vm254_vm0, %v913_v46 }
 0x28d   :  { %v3408_v2 = vpop.f32.mrb[4].mxu1  ;;  %v3415_v3 = vpop.f32.mrb[2].mxu0 }
 0x28e   :  { %v593_v7 = vpop.f32.mrb[5].mxu1  ;;  %v709_v8 = vpop.f32.mrb[3].mxu0  ;;  %v599_v13 = vadd.f32 %v3408_v2, %v4616_v4  ;;  %v715_v14 = vadd.f32 %v3415_v3, %v4616_v4 }
 0x28f   :  { %v594_v9 = vadd.f32 %v593_v7, %v4611_v1  ;;  %v710_v11 = vadd.f32 %v709_v8, %v4611_v1 }
 0x290   :  { %v721_v18 = vsel %vm602_vm2, %v715_v14, -inf  ;;  %v606_v19 = vsel %vm602_vm2, %v599_v13, -inf }
 0x291   :  { %v718_v15 = vsel %vm602_vm2, %v710_v11, -inf  ;;  %v603_v16 = vsel %vm602_vm2, %v594_v9, -inf }
 0x292   :  { %719 = vmax.xlane.f32.xlu0 %v718_v15  ;;  %604 = vmax.xlane.f32.xlu1 %v603_v16 }
 0x295   :  { %v3436_v17 = vpop.f32.mrb[4].mxu0 }
 0x296   :  { %v992_v20 = vadd.f32 %v3436_v17, %v4616_v4  ;;  %v986_v21 = vpop.f32.mrb[5].mxu0  ;;  %722 = vmax.xlane.f32.xlu0 %v721_v18  ;;  %607 = vmax.xlane.f32.xlu1 %v606_v19 }
 0x297   :  { %v987_v22 = vadd.f32 %v986_v21, %v4611_v1 }
 0x298   :  { %v998_v23 = vsel %vm602_vm2, %v992_v20, -inf }
 0x299   :  { %v995_v24 = vsel %vm602_vm2, %v987_v22, -inf }
 0x29a   :  { %996 = vmax.xlane.f32.xlu0 %v995_v24  ;;  %999 = vmax.xlane.f32.xlu1 %v998_v23 }
 0x31f   :  { %v720_v25 = vpop.xlane.xlu0 %719  ;;  %v605_v26 = vpop.xlane.xlu1 %604 }
 0x320   :  { %v724_v27 = vsub.f32 %v710_v11, %v720_v25  ;;  %v609_v31 = vsub.f32 %v594_v9, %v605_v26  ;;  %v1110_v25 = vmul.f32 %v4595_v57, %v4529_v30 }
 0x322   :  { %v726_v32 = vmul.f32 1.442695, %v724_v27  ;;  %v611_v33 = vmul.f32 1.442695, %v609_v31 }
 0x323   :  { %v723_v34 = vpop.xlane.xlu0 %722  ;;  %v608_v35 = vpop.xlane.xlu1 %607 }
 0x324   :  { %3848 = vpow2.f32 %v726_v32  ;;  %v725_v36 = vsub.f32 %v715_v14, %v723_v34  ;;  %v610_v37 = vsub.f32 %v599_v13, %v608_v35 }
 0x325   :  { %3850 = vpow2.f32 %v611_v33 }
 0x326   :  { %v728_v39 = vmul.f32 1.442695, %v725_v36  ;;  %v613_v43 = vmul.f32 1.442695, %v610_v37 }
 0x327   :  { %v997_v44 = vpop.xlane.xlu0 %996  ;;  %v1000_v45 = vpop.xlane.xlu1 %999 }
 0x328   :  { %3852 = vpow2.f32 %v728_v39  ;;  %v1001_v46 = vsub.f32 %v987_v22, %v997_v44  ;;  %v1002_v47 = vsub.f32 %v992_v20, %v1000_v45  ;;  %v223_v45 = vld [vmem:[#allocation5] sm:$0xff] }
 0x329   :  { %3854 = vpow2.f32 %v613_v43 }
 0x32a   :  { %v1003_v48 = vmul.f32 1.442695, %v1001_v46  ;;  %v1005_v49 = vmul.f32 1.442695, %v1002_v47  ;;  %v224_v46 = vld [vmem:[#allocation5 + $0x8] sm:$0xff]  ;;  %v225_v47 = vld [vmem:[#allocation5 + $0x10] sm:$0xff] }
 0x32c   :  { %3856 = vpow2.f32 %v1003_v48  ;;  %v3693_v48 = vpack.c.bf16 %v224_v46, %v223_v45  ;;  %v3146_v45 = vld [vmem:[#allocation8] ss:$0 sm:$0xff] }
 0x32d   :  { %3858 = vpow2.f32 %v1005_v49  ;;  %v226_v49 = vld [vmem:[#allocation5 + $0x18] sm:$0xff] }
 0x32e   :  { %v3849_v50 = vpop.eup %3848  ;;  %3694 = vmatprep.subr.bf16.mxu0 %v3693_v48 }
 0x32f   :  { %v730_v51 = vsel %vm602_vm2, %v3849_v50, 0.0  ;;  %v3851_v52 = vpop.eup %3850  ;;  %3696 = vmatpush3.bf16.msra.mxu0 %v3693_v48 }
 0x330   :  { %731 = vadd.xlane.f32.xlu0 %v730_v51  ;;  %v615_v55 = vsel %vm602_vm2, %v3851_v52, 0.0 }
 0x332   :  { %v3853_v53 = vpop.eup %3852 }
 0x333   :  { %v733_v54 = vsel %vm602_vm2, %v3853_v53, 0.0  ;;  %v3855_v56 = vpop.eup %3854 }
 0x334   :  { %734 = vadd.xlane.f32.xlu1 %v733_v54  ;;  %616 = vadd.xlane.f32.xlu0 %v615_v55  ;;  %v618_v61 = vsel %vm602_vm2, %v3855_v56, 0.0 }
 0x336   :  { %v3857_v59 = vpop.eup %3856 }
 0x337   :  { %v1007_v60 = vsel %vm602_vm2, %v3857_v59, 0.0  ;;  %v3859_v62 = vpop.eup %3858 }
 0x338   :  { %1008 = vadd.xlane.f32.xlu0 %v1007_v60  ;;  %619 = vadd.xlane.f32.xlu1 %v618_v61  ;;  %v1010_v2 = vsel %vm602_vm2, %v3859_v62, 0.0  ;;  %v3143_v61 = vld [vmem:[#allocation7] ss:$0 sm:$0xff] }
 0x33c   :  { %1011 = vadd.xlane.f32.xlu1 %v1010_v2 }
 0x3bd   :  { %v732_v3 = vpop.xlane.xlu0 %731 }
 0x3be   :  { %3860 = vrcp.f32 %v732_v3 }
 0x3c1   :  { %v617_v7 = vpop.xlane.xlu0 %616  ;;  %v735_v8 = vpop.xlane.xlu1 %734 }
 0x3c2   :  { %3862 = vrcp.f32 %v617_v7 }
 0x3c3   :  { %3864 = vrcp.f32 %v735_v8 }
 0x3c5   :  { %v620_v9 = vpop.xlane.xlu1 %619  ;;  %v1009_v11 = vpop.xlane.xlu0 %1008 }
 0x3c6   :  { %3866 = vrcp.f32 %v620_v9 }
 0x3c7   :  { %3868 = vrcp.f32 %v1009_v11 }
 0x3c8   :  { %v3861_v13 = vpop.eup %3860 }
 0x3c9   :  { %v738_v14 = vmul.f32 %v3861_v13, %v3849_v50  ;;  %v1012_v19 = vpop.xlane.xlu1 %1011  ;;  %v3697_v50 = vpack.c.bf16 %v226_v49, %v225_v47  ;;  %v3147_v49 = vld [vmem:[#allocation10] ss:$0 sm:$0xff] }
 0x3ca   :  { %3870 = vrcp.f32 %v1012_v19 }
 0x3cb   :  { %3420 = vmatprep.mubr.msk.f32.mxu1 %vm602_vm2, %v738_v14  ;;  %3698 = vmatprep.subr.bf16.mxu0 %v3697_v50 }
 0x3cc   :  { %v3863_v15 = vpop.eup %3862  ;;  %3700 = vmatpush3.bf16.msra.mxu0 %v3697_v50 }
 0x3cd   :  { %v3865_v16 = vpop.eup %3864  ;;  %v623_v17 = vmul.f32 %v3863_v15, %v3851_v52 }
 0x3ce   :  { %v739_v18 = vmul.f32 %v3865_v16, %v3853_v53 }
 0x3d0   :  { %3421 = vmatmul.mubr.msk.f32.vlgmr.msra.gmra.mrb[6].mxu1 %vm602_vm2, %v739_v18  ;;  %v3867_v20 = vpop.eup %3866 }
 0x3d1   :  { %3672 = vmatpush3.bf16.msra.mxu1 %v4597_v58  ;;  %3427 = vmatprep.mubr.msk.f32.mxu1 %vm602_vm2, %v623_v17  ;;  %v3869_v21 = vpop.eup %3868  ;;  %v624_v22 = vmul.f32 %v3867_v20, %v3855_v56 }
 0x3d2   :  { %3680 = vmatprep.subr.bf16.mxu1 %v4604_v63  ;;  %v1015_v23 = vmul.f32 %v3869_v21, %v3857_v59 }
 0x3d4   :  { %v3871_v24 = vpop.eup %3870 }
 0x3d5   :  { %v1016_v58 = vmul.f32 %v3871_v24, %v3859_v62 }
 0x3d8   :  { %3428 = vmatmul.mubr.msk.f32.vlgmr.msra.gmra.mrb[6].mxu1 %vm602_vm2, %v624_v22 }
 0x3d9   :  { %3682 = vmatpush3.bf16.msra.mxu1 %v4604_v63  ;;  %3441 = vmatprep.mubr.msk.f32.mxu1 %vm602_vm2, %v1015_v23  ;;  %v1111_v63 = vmul.f32 %v4595_v57, %v4560_v41  ;;  %v231_v23 = vld [vmem:[#allocation11 + $0x8] sm:$0xff] }
 0x3da   :  { %3685 = vmatprep.subr.msk.bf16.mxu1 %vm4542_vm1, %v4546_v40 }
 0x3e0   :  { %3442 = vmatmul.mubr.msk.f32.vlgmr.msra.gmra.mrb[6].mxu1 %vm602_vm2, %v1016_v58  ;;  %v232_v58 = vld [vmem:[#allocation11 + $0x10] sm:$0xff] }
 0x3e1   :  { %3448 = vmatprep.mubr.msk.f32.mxu1 %vm254_vm0, %v1110_v25  ;;  %v233_v25 = vld [vmem:[#allocation11 + $0x18] sm:$0xff] }
 0x3e2   :  { %3688 = vmatpush3.bf16.xpose.msk.msra.mxu1 %vm4542_vm1, %v4546_v40 }
 0x3e3   :  { %3690 = vmatprep.subr.bf16.mxu1 %v4606_v0 }
 0x3e9   :  { %3449 = vmatmul.mubr.msk.f32.vlgmr.msra.gmra.mrb[8].mxu1 %vm254_vm0, %v1111_v63  ;;  %v3705_v63 = vpack.c.bf16 %v233_v25, %v232_v58 }
 0x3ea   :  { %3692 = vmatpush3.bf16.msra.mxu1 %v4606_v0 }
 0x4bc   :  { %v3450_v26 = vpop.f32.mrb[8].mxu1 }
 0x4bd   :  { %v1190_v30 = vadd.f32 %v3450_v26, %v4616_v4  ;;  %v1184_v27 = vpop.f32.mrb[9].mxu1  ;;  %v235_v26 = vld [vmem:[%s4925_s16] sm:$0xff] }
 0x4be   :  { %v1185_v31 = vadd.f32 %v1184_v27, %v4611_v1  ;;  %v237_v27 = vld [vmem:[%s4925_s16 + $0x10] sm:$0xff] }
 0x4bf   :  { %v1196_v32 = vsel %vm602_vm2, %v1190_v30, -inf }
 0x4c0   :  { %1197 = vmax.xlane.f32.xlu1 %v1196_v32  ;;  %v1193_v40 = vsel %vm602_vm2, %v1185_v31, -inf  ;;  %v238_v32 = vld [vmem:[%s4925_s16 + $0x18] sm:$0xff] }
 0x4c1   :  { %1194 = vmax.xlane.f32.xlu0 %v1193_v40  ;;  %v3713_v40 = vpack.c.bf16 %v238_v32, %v237_v27  ;;  %v3156_v27 = vld [vmem:[%s4943_s25 + $0x20] sm:$0xff] }
 0x54d   :  { %v1198_v33 = vpop.xlane.xlu1 %1197 }
 0x54e   :  { %v1200_v34 = vsub.f32 %v1190_v30, %v1198_v33  ;;  %v1195_v35 = vpop.xlane.xlu0 %1194  ;;  %v236_v30 = vld [vmem:[%s4925_s16 + $0x8] sm:$0xff]  ;;  %v239_v33 = vld [vmem:[%s4925_s16 + $0x20] sm:$0xff] }
 0x54f   :  { %v1199_v41 = vsub.f32 %v1185_v31, %v1195_v35  ;;  %v3709_v31 = vpack.c.bf16 %v236_v30, %v235_v26  ;;  %v3167_v26 = vld [vmem:[%s4917_s8 + $0x28] sm:$0xff] }
 0x550   :  { %v1203_v36 = vmul.f32 1.442695, %v1200_v34  ;;  %v240_v34 = vld [vmem:[%s4925_s16 + $0x28] sm:$0xff] }
 0x551   :  { %v1201_v37 = vmul.f32 1.442695, %v1199_v41  ;;  %3710 = vmatprep.subr.bf16.mxu1 %v3709_v31  ;;  %v3717_v35 = vpack.c.bf16 %v240_v34, %v239_v33  ;;  %v3169_v33 = vld [vmem:[%s4917_s8 + $0x38] sm:$0xff]  ;;  %v3158_v34 = vld [vmem:[%s4943_s25 + $0x30] sm:$0xff] }
 0x552   :  { %3872 = vpow2.f32 %v1203_v36 }
 0x553   :  { %3874 = vpow2.f32 %v1201_v37 }
 0x55c   :  { %v3873_v0 = vpop.eup %3872 }
 0x55d   :  { %v3875_v39 = vpop.eup %3874  ;;  %v1208_v43 = vsel %vm602_vm2, %v3873_v0, 0.0 }
 0x55e   :  { %1209 = vadd.xlane.f32.xlu1 %v1208_v43  ;;  %v1205_v44 = vsel %vm602_vm2, %v3875_v39, 0.0 }
 0x55f   :  { %1206 = vadd.xlane.f32.xlu0 %v1205_v44 }
 0x5eb   :  { %v1210_v51 = vpop.xlane.xlu1 %1209 }
 0x5ec   :  { %3876 = vrcp.f32 %v1210_v51  ;;  %v1207_v52 = vpop.xlane.xlu0 %1206 }
 0x5ed   :  { %3878 = vrcp.f32 %v1207_v52 }
 0x5f6   :  { %v3877_v53 = vpop.eup %3876 }
 0x5f7   :  { %v3879_v54 = vpop.eup %3878  ;;  %v1214_v56 = vmul.f32 %v3877_v53, %v3873_v0 }
 0x5f8   :  { %v1213_v55 = vmul.f32 %v3879_v54, %v3875_v39  ;;  %v241_v54 = vld [vmem:[%s4925_s16 + $0x30] sm:$0xff] }
 0x5fa   :  { %3455 = vmatprep.mubr.msk.f32.mxu1 %vm602_vm2, %v1213_v55  ;;  %v242_v55 = vld [vmem:[%s4925_s16 + $0x38] sm:$0xff] }
 0x5fb   :  { %3456 = vmatmul.mubr.msk.f32.vlgmr.msra.gmra.mrb[6].mxu1 %vm602_vm2, %v1214_v56  ;;  %v3721_v56 = vpack.c.bf16 %v242_v55, %v241_v54 }
 0x5fc   :  { %3712 = vmatpush3.bf16.msra.mxu1 %v3709_v31  ;;  %v3157_v31 = vld [vmem:[%s4943_s25 + $0x28] sm:$0xff] }
 0x5fd   :  { %3714 = vmatprep.subr.bf16.mxu1 %v3713_v40  ;;  %v3725_v32 = vpack.c.bf16 %v3157_v31, %v3156_v27 }
 0x600   :  { %3716 = vmatpush3.bf16.msra.mxu1 %v3713_v40  ;;  %v3168_v40 = vld [vmem:[%s4917_s8 + $0x30] sm:$0xff] }
 0x601   :  { %3718 = vmatprep.subr.bf16.mxu1 %v3717_v35 }
 0x604   :  { %3720 = vmatpush3.bf16.msra.mxu1 %v3717_v35  ;;  %v3745_v35 = vpack.c.bf16 %v3169_v33, %v3168_v40 }
 0x605   :  { %3722 = vmatprep.subr.bf16.mxu1 %v3721_v56 }
 0x608   :  { %3724 = vmatpush3.bf16.msra.mxu1 %v3721_v56 }
 0x6ce   :  { %v3457_v59 = vpop.f32.mrb[6].mxu1 }
 0x6cf   :  { %v1289_v60 = vpop.f32.mrb[7].mxu1 }
 0x6d0   :  { %3466 = vmatprep.mubr.msk.f32.mxu0 %vm254_vm0, %v1289_v60 }
 0x6d1   :  { %3467 = vmatmul.mubr.msk.f32.vlgmr.msra.gmra.mrb[6].mxu0 %vm254_vm0, %v3457_v59  ;;  %v3148_v59 = vld [vmem:[#allocation13] ss:$0 sm:$0xff] }
 0x7a4   :  { %v3468_v62 = vpop.f32.mrb[6].mxu0 }
 0x7a5   :  { %v1384_v2 = vadd.f32 %v3468_v62, %v3143_v61  ;;  %v1378_v3 = vpop.f32.mrb[7].mxu0 }
 0x7a6   :  { %v1379_v7 = vadd.f32 %v3143_v61, %v1378_v3 }
 0x7a7   :  { %v1388_v8 = vadd.f32 %v1384_v2, %v4483_v10 }
 0x7a8   :  { %v1387_v9 = vadd.f32 %v1379_v7, %v4469_v5  ;;  %v230_v5 = vld [vmem:[#allocation11] sm:$0xff] }
 0x7a9   :  { %v1392_v11 = vsel %vm254_vm0, %v1388_v8, 0.0  ;;  %v3701_v24 = vpack.c.bf16 %v231_v23, %v230_v5 }
 0x7aa   :  { %1393 = vadd.xlane.f32.xlu1 %v1392_v11  ;;  %v1389_v13 = vsel %vm254_vm0, %v1387_v9, 0.0 }
 0x7ab   :  { %1390 = vadd.xlane.f32.xlu0 %v1389_v13  ;;  %3702 = vmatprep.subr.bf16.mxu0 %v3701_v24 }
 0x7ac   :  { %3704 = vmatpush3.bf16.msra.mxu0 %v3701_v24 }
 0x7ad   :  { %3706 = vmatprep.subr.bf16.mxu0 %v3705_v63 }
 0x7b0   :  { %3708 = vmatpush3.bf16.msra.mxu0 %v3705_v63  ;;  %v3166_v63 = vld [vmem:[%s4917_s8 + $0x20] sm:$0xff] }
 0x7b1   :  { %v3741_v30 = vpack.c.bf16 %v3167_v26, %v3166_v63  ;;  %3726 = vmatprep.subr.bf16.mxu0 %v3725_v32  ;;  %v3182_v63 = vld [vmem:[%s4916_s7 + $0x1] ss:$0 sm:$0xff] }
 0x7b3   :  { %3742 = vmatprep.subr.bf16.mxu1 %v3741_v30 }
 0x837   :  { %v1394_v14 = vpop.xlane.xlu1 %1393 }
 0x838   :  { %v1397_v15 = vmul.f32 0.03125, %v1394_v14  ;;  %v1391_v16 = vpop.xlane.xlu0 %1390 }
 0x839   :  { %v1396_v17 = vmul.f32 0.03125, %v1391_v16 }
 0x83a   :  { %v1399_v18 = vsub.f32 %v1388_v8, %v1397_v15  ;;  %v3151_v8 = vld [vmem:[#allocation14] ss:$0 sm:$0xff] }
 0x83b   :  { %v1398_v19 = vsub.f32 %v1387_v9, %v1396_v17 }
 0x83c   :  { %v1401_v20 = vmul.f32 %v1399_v18, %v1399_v18 }
 0x83d   :  { %v1400_v21 = vmul.f32 %v1398_v19, %v1398_v19 }
 0x83e   :  { %v1405_v22 = vsel %vm254_vm0, %v1401_v20, 0.0 }
 0x83f   :  { %1406 = vadd.xlane.f32.xlu1 %v1405_v22  ;;  %v1402_v10 = vsel %vm254_vm0, %v1400_v21, 0.0 }
 0x840   :  { %1403 = vadd.xlane.f32.xlu0 %v1402_v10 }
 0x8cc   :  { %v1407_v41 = vpop.xlane.xlu1 %1406 }
 0x8cd   :  { %v1409_v36 = vmul.f32 0.03125, %v1407_v41  ;;  %v1404_v37 = vpop.xlane.xlu0 %1403  ;;  %v3159_v41 = vld [vmem:[%s4943_s25 + $0x38] sm:$0xff] }
 0x8ce   :  { %v1408_v0 = vmul.f32 0.03125, %v1404_v37  ;;  %v3161_v37 = vld [vmem:[%s4915_s6 + $0x20] sm:$0xff] }
 0x8cf   :  { %v1411_v39 = vadd.f32 1e-05, %v1409_v36  ;;  %v3729_v36 = vpack.c.bf16 %v3159_v41, %v3158_v34 }
 0x8d0   :  { %v1410_v43 = vadd.f32 1e-05, %v1408_v0  ;;  %v3162_v0 = vld [vmem:[%s4915_s6 + $0x28] sm:$0xff] }
 0x8d1   :  { %3880 = vrsqrt.f32 %v1411_v39  ;;  %v3733_v39 = vpack.c.bf16 %v3162_v0, %v3161_v37 }
 0x8d2   :  { %3882 = vrsqrt.f32 %v1410_v43 }
 0x8db   :  { %v3881_v44 = vpop.eup %3880 }
 0x8dc   :  { %v3883_v46 = vpop.eup %3882  ;;  %v1415_v47 = vmul.f32 %v3881_v44, %v1399_v18 }
 0x8dd   :  { %v1414_v48 = vmul.f32 %v3883_v46, %v1398_v19 }
 0x8de   :  { %v1423_v50 = vmul.f32 %v3146_v45, %v1415_v47 }
 0x8df   :  { %v1422_v51 = vmul.f32 %v3146_v45, %v1414_v48 }
 0x8e0   :  { %v1431_v53 = vadd.f32 %v3147_v49, %v1423_v50  ;;  %v3154_v50 = vld [vmem:[#allocation16] ss:$0 sm:$0xff] }
 0x8e1   :  { %v1430_v52 = vadd.f32 %v3147_v49, %v1422_v51 }
 0x8e3   :  { %3477 = vmatprep.mubr.msk.f32.mxu0 %vm254_vm0, %v1430_v52 }
 0x8e4   :  { %3478 = vmatmul.mubr.msk.f32.vlgmr.msra.gmra.mrb[8].mxu0 %vm254_vm0, %v1431_v53 }
 0x8e5   :  { %3728 = vmatpush3.bf16.msra.mxu0 %v3725_v32 }
 0x8e6   :  { %3730 = vmatprep.subr.bf16.mxu0 %v3729_v36 }
 0x8e9   :  { %3732 = vmatpush3.bf16.msra.mxu0 %v3729_v36 }
 0x8ea   :  { %3734 = vmatprep.subr.bf16.mxu0 %v3733_v39 }
 0x9b7   :  { %v3479_v60 = vpop.f32.mrb[8].mxu0 }
 0x9b8   :  { %v1516_v61 = vadd.f32 %v3479_v60, %v3148_v59  ;;  %v1510_v62 = vpop.f32.mrb[9].mxu0 }
 0x9b9   :  { %v1511_v2 = vadd.f32 %v3148_v59, %v1510_v62  ;;  %v3164_v62 = vld [vmem:[%s4915_s6 + $0x38] sm:$0xff] }
 0x9ba   :  { %v1520_v7 = vmax.f32 %v1516_v61, 0.0  ;;  %v3163_v61 = vld [vmem:[%s4915_s6 + $0x30] sm:$0xff] }
 0x9bb   :  { %v1519_v3 = vmax.f32 %v1511_v2, 0.0 }
 0x9bd   :  { %3496 = vmatprep.mubr.msk.f32.mxu1 %vm1527_vm3, %v1519_v3 }
 0x9be   :  { %3497 = vmatmul.mubr.msk.f32.vlgmr.msra.gmra.mrb[10].mxu1 %vm1527_vm3, %v1520_v7  ;;  %v3737_v7 = vpack.c.bf16 %v3164_v62, %v3163_v61 }
 0x9bf   :  { %3744 = vmatpush3.bf16.msra.mxu1 %v3741_v30 }
 0x9c0   :  { %3746 = vmatprep.subr.bf16.mxu1 %v3745_v35 }
 0x9c3   :  { %3748 = vmatpush3.bf16.msra.mxu1 %v3745_v35 }
 0xa91   :  { %v3498_v9 = vpop.f32.mrb[10].mxu1 }
 0xa92   :  { %v1606_v11 = vadd.f32 %v3498_v9, %v3151_v8  ;;  %v1600_v13 = vpop.f32.mrb[11].mxu1 }
 0xa93   :  { %v1601_v14 = vadd.f32 %v3151_v8, %v1600_v13 }
 0xa94   :  { %v1610_v15 = vadd.f32 %v1606_v11, %v1431_v53  ;;  %v3155_v53 = vld [vmem:[#allocation17] ss:$0 sm:$0xff] }
 0xa95   :  { %v1609_v16 = vadd.f32 %v1601_v14, %v1430_v52 }
 0xa96   :  { %v1614_v17 = vsel %vm254_vm0, %v1610_v15, 0.0 }
 0xa97   :  { %1615 = vadd.xlane.f32.xlu1 %v1614_v17  ;;  %v1611_v18 = vsel %vm254_vm0, %v1609_v16, 0.0 }
 0xa98   :  { %1612 = vadd.xlane.f32.xlu0 %v1611_v18 }
 0xb24   :  { %v1616_v19 = vpop.xlane.xlu1 %1615 }
 0xb25   :  { %v1618_v20 = vmul.f32 0.03125, %v1616_v19  ;;  %v1613_v21 = vpop.xlane.xlu0 %1612 }
 0xb26   :  { %v1617_v22 = vmul.f32 0.03125, %v1613_v21 }
 0xb27   :  { %v1620_v10 = vsub.f32 %v1610_v15, %v1618_v20 }
 0xb28   :  { %v1619_v5 = vsub.f32 %v1609_v16, %v1617_v22 }
 0xb29   :  { %v1622_v23 = vmul.f32 %v1620_v10, %v1620_v10 }
 0xb2a   :  { %v1621_v24 = vmul.f32 %v1619_v5, %v1619_v5 }
 0xb2b   :  { %v1626_v58 = vsel %vm254_vm0, %v1622_v23, 0.0 }
 0xb2c   :  { %1627 = vadd.xlane.f32.xlu1 %v1626_v58  ;;  %v1623_v25 = vsel %vm254_vm0, %v1621_v24, 0.0 }
 0xb2d   :  { %1624 = vadd.xlane.f32.xlu0 %v1623_v25 }
 0xbb9   :  { %v1628_v43 = vpop.xlane.xlu1 %1627 }
 0xbba   :  { %v1630_v44 = vmul.f32 0.03125, %v1628_v43  ;;  %v1625_v45 = vpop.xlane.xlu0 %1624 }
 0xbbb   :  { %v1629_v46 = vmul.f32 0.03125, %v1625_v45 }
 0xbbc   :  { %v1632_v47 = vadd.f32 1e-05, %v1630_v44 }
 0xbbd   :  { %v1631_v48 = vadd.f32 1e-05, %v1629_v46 }
 0xbbe   :  { %3884 = vrsqrt.f32 %v1632_v47 }
 0xbbf   :  { %3886 = vrsqrt.f32 %v1631_v48 }
 0xbc8   :  { %v3885_v49 = vpop.eup %3884 }
 0xbc9   :  { %v3887_v51 = vpop.eup %3886  ;;  %v1636_v52 = vmul.f32 %v3885_v49, %v1620_v10 }
 0xbca   :  { %v1635_v54 = vmul.f32 %v3887_v51, %v1619_v5 }
 0xbcb   :  { %v1644_v55 = vmul.f32 %v3154_v50, %v1636_v52 }
 0xbcc   :  { %v1643_v56 = vmul.f32 %v3154_v50, %v1635_v54 }
 0xbcd   :  { %v4737_v59 = vadd.f32 %v3155_v53, %v1644_v55 }
 0xbce   :  { %v4739_v60 = vadd.f32 %v3155_v53, %v1643_v56 }
 0xbcf   :  { %v1708_v3 = vadd.f32 %v4737_v59, %v4489_v12  ;;  %v3179_v12 = vld [vmem:[%s4914_s5 + $0x1] ss:$0 sm:$0xff] }
 0xbd0   :  { %3529 = vmatprep.mubr.msk.f32.mxu1 %vm254_vm0, %v4739_v60  ;;  %v1707_v2 = vadd.f32 %v4739_v60, %v4471_v6  ;;  %v3185_v6 = vld [vmem:[%s4918_s9 + $0x1] ss:$0 sm:$0xff] }
 0xbd1   :  { %3530 = vmatmul.mubr.msk.f32.vlgmr.msra.gmra.mrb[12].mxu1 %vm254_vm0, %v4737_v59 }
 0xbd2   :  { %3507 = vmatprep.mubr.msk.f32.mxu0 %vm254_vm0, %v1707_v2 }
 0xbd3   :  { %3508 = vmatmul.mubr.msk.f32.vlgmr.msra.gmra.mrb[10].mxu0 %vm254_vm0, %v1708_v3 }
 0xbd4   :  { %3736 = vmatpush3.bf16.msra.mxu0 %v3733_v39  ;;  %3518 = vmatprep.mubr.msk.f32.mxu0 %vm254_vm0, %v1707_v2 }
 0xbd5   :  { %3738 = vmatprep.subr.bf16.mxu0 %v3737_v7 }
 0xbd8   :  { %3740 = vmatpush3.bf16.msra.mxu0 %v3737_v7 }
 0xbdb   :  { %3519 = vmatmul.mubr.msk.f32.vlgmr.msra.gmra.mrb[12].mxu0 %vm254_vm0, %v1708_v3 }
 0xca4   :  { %v3531_v8 = vpop.f32.mrb[12].mxu1 }
 0xca5   :  { %v1963_v9 = vadd.f32 %v3531_v8, %v3185_v6  ;;  %v1957_v11 = vpop.f32.mrb[13].mxu1 }
 0xca6   :  { %v1958_v13 = vadd.f32 %v3185_v6, %v1957_v11  ;;  %v3509_v14 = vpop.f32.mrb[10].mxu0 }
 0xca7   :  { %v1787_v15 = vpop.f32.mrb[11].mxu0  ;;  %v2185_v16 = vmul.f32 %v4527_v29, %v1963_v9  ;;  %v2078_v17 = vmul.f32 %v4522_v28, %v1963_v9  ;;  %v2454_v18 = vmul.f32 %v4568_v42, %v1963_v9  ;;  %v2644_v5 = vmul.f32 %v4595_v57, %v1963_v9 }
 0xca8   :  { %v1788_v19 = vadd.f32 %v3179_v12, %v1787_v15  ;;  %v2184_v20 = vmul.f32 %v4527_v29, %v1958_v13  ;;  %v2077_v21 = vmul.f32 %v4522_v28, %v1958_v13  ;;  %v2453_v22 = vmul.f32 %v4568_v42, %v1958_v13 }
 0xca9   :  { %v2643_v10 = vmul.f32 %v4595_v57, %v1958_v13  ;;  %v1793_v34 = vadd.f32 %v3509_v14, %v3179_v12 }
 0xcaa   :  { %v1796_v23 = vmul.f32 0.35355338, %v1788_v19  ;;  %v3761_v24 = vpack.c.bf16 %v2185_v16, %v2184_v20  ;;  %v4773_v58 = vpack.c.bf16 %v2078_v17, %v2077_v21  ;;  %v4775_v25 = vpack.c.bf16 %v2454_v18, %v2453_v22 }
 0xcab   :  { %v4782_v27 = vpack.c.bf16 %v2644_v5, %v2643_v10  ;;  %v1797_v41 = vmul.f32 0.35355338, %v1793_v34 }
 0xcac   :  { %v1966_v26 = vmul.f32 %v4522_v28, %v1796_v23  ;;  %v2079_v30 = vmul.f32 %v4527_v29, %v1796_v23  ;;  %v2348_v0 = vmul.f32 %v4568_v42, %v1796_v23 }
 0xcad   :  { %v1967_v36 = vmul.f32 %v4522_v28, %v1797_v41  ;;  %v2080_v37 = vmul.f32 %v4527_v29, %v1797_v41  ;;  %v2349_v28 = vmul.f32 %v4568_v42, %v1797_v41  ;;  %v2538_v29 = vmul.f32 %v4595_v57, %v1796_v23 }
 0xcae   :  { %v3520_v31 = vpop.f32.mrb[12].mxu0  ;;  %3536 = vmatprep.mubr.msk.f32.mxu0 %vm254_vm0, %v1966_v26  ;;  %3543 = vmatprep.mubr.msk.f32.mxu1 %vm254_vm0, %v2079_v30  ;;  %v2539_v39 = vmul.f32 %v4595_v57, %v1797_v41 }
 0xcaf   :  { %v1876_v32 = vadd.f32 %v3520_v31, %v3182_v63  ;;  %v1870_v40 = vpop.f32.mrb[13].mxu0 }
 0xcb0   :  { %v1871_v33 = vadd.f32 %v3182_v63, %v1870_v40 }
 0xcb2   :  { %v3749_v35 = vpack.c.bf16 %v1876_v32, %v1871_v33 }
 0xcb4   :  { %3751 = vmatprep.subr.msk.bf16.mxu0 %vm4542_vm1, %v3749_v35  ;;  %3757 = vmatprep.subr.msk.bf16.mxu1 %vm4542_vm1, %v3749_v35 }
 0xcb5   :  { %3754 = vmatpush3.bf16.xpose.msk.msra.mxu0 %vm4542_vm1, %v3749_v35  ;;  %3760 = vmatpush3.bf16.xpose.msk.msra.mxu1 %vm4542_vm1, %v3749_v35 }
 0xcb6   :  { %3762 = vmatprep.subr.bf16.mxu0 %v3761_v24  ;;  %3771 = vmatprep.subr.msk.bf16.mxu1 %vm4542_vm1, %v3749_v35 }
 0xcbc   :  { %3537 = vmatmul.mubr.msk.f32.vlgmr.msra.gmra.mrb[14].mxu0 %vm254_vm0, %v1967_v36  ;;  %3544 = vmatmul.mubr.msk.f32.vlgmr.msra.gmra.mrb[14].mxu1 %vm254_vm0, %v2080_v37 }
 0xcbd   :  { %3764 = vmatpush3.bf16.msra.mxu0 %v3761_v24  ;;  %3774 = vmatpush3.bf16.xpose.msk.msra.mxu1 %vm4542_vm1, %v3749_v35 }
 0xcbe   :  { %3564 = vmatprep.mubr.msk.f32.mxu1 %vm254_vm0, %v2348_v0  ;;  %3766 = vmatprep.subr.bf16.mxu0 %v4773_v58 }
 0xcbf   :  { %3781 = vmatprep.subr.msk.bf16.mxu1 %vm4542_vm1, %v3749_v35 }
 0xcc4   :  { %3565 = vmatmul.mubr.msk.f32.vlgmr.msra.gmra.mrb[16].mxu1 %vm254_vm0, %v2349_v28 }
 0xcc5   :  { %3784 = vmatpush3.bf16.xpose.msk.msra.mxu1 %vm4542_vm1, %v3749_v35  ;;  %3578 = vmatprep.mubr.msk.f32.mxu1 %vm254_vm0, %v2538_v29 }
 0xccc   :  { %3579 = vmatmul.mubr.msk.f32.vlgmr.msra.gmra.mrb[18].mxu1 %vm254_vm0, %v2539_v39 }
 0xd8f   :  { %v3538_v43 = vpop.f32.mrb[14].mxu0  ;;  %v3545_v44 = vpop.f32.mrb[14].mxu1 }
 0xd90   :  { %v2159_v45 = vadd.f32 %v3545_v44, %v4616_v4  ;;  %v2046_v46 = vpop.f32.mrb[15].mxu0  ;;  %v2153_v47 = vpop.f32.mrb[15].mxu1  ;;  %v2052_v48 = vadd.f32 %v3538_v43, %v4616_v4 }
 0xd91   :  { %v2154_v42 = vadd.f32 %v2153_v47, %v4611_v1  ;;  %v2047_v38 = vadd.f32 %v2046_v46, %v4611_v1 }
 0xd92   :  { %v2165_v49 = vsel %vm602_vm2, %v2159_v45, -inf  ;;  %v2058_v57 = vsel %vm602_vm2, %v2052_v48, -inf }
 0xd93   :  { %2166 = vmax.xlane.f32.xlu1 %v2165_v49  ;;  %v2162_v50 = vsel %vm602_vm2, %v2154_v42, -inf  ;;  %v2055_v52 = vsel %vm602_vm2, %v2047_v38, -inf }
 0xd94   :  { %2163 = vmax.xlane.f32.xlu0 %v2162_v50 }
 0xd97   :  { %v3566_v51 = vpop.f32.mrb[16].mxu1  ;;  %2059 = vmax.xlane.f32.xlu1 %v2058_v57 }
 0xd98   :  { %v2428_v53 = vadd.f32 %v3566_v51, %v4616_v4  ;;  %v2422_v54 = vpop.f32.mrb[17].mxu1  ;;  %2056 = vmax.xlane.f32.xlu0 %v2055_v52 }
 0xd99   :  { %v2423_v55 = vadd.f32 %v2422_v54, %v4611_v1 }
 0xd9a   :  { %v2434_v56 = vsel %vm602_vm2, %v2428_v53, -inf }
 0xd9b   :  { %2435 = vmax.xlane.f32.xlu1 %v2434_v56  ;;  %v2431_v61 = vsel %vm602_vm2, %v2423_v55, -inf }
 0xd9c   :  { %2432 = vmax.xlane.f32.xlu0 %v2431_v61 }
 0xd9f   :  { %v3580_v62 = vpop.f32.mrb[18].mxu1 }
 0xda0   :  { %v2618_v2 = vadd.f32 %v3580_v62, %v4616_v4  ;;  %v2612_v3 = vpop.f32.mrb[19].mxu1 }
 0xda1   :  { %v2613_v7 = vadd.f32 %v2612_v3, %v4611_v1 }
 0xda2   :  { %v2624_v6 = vsel %vm602_vm2, %v2618_v2, -inf }
 0xda3   :  { %2625 = vmax.xlane.f32.xlu1 %v2624_v6  ;;  %v2621_v8 = vsel %vm602_vm2, %v2613_v7, -inf }
 0xda4   :  { %2622 = vmax.xlane.f32.xlu0 %v2621_v8  ;;  %v1675_v8 = vld [vmem:[#allocation5 + $0x20] sm:$0xff] }
 0xe20   :  { %v2167_v9 = vpop.xlane.xlu1 %2166 }
 0xe21   :  { %v2169_v11 = vsub.f32 %v2159_v45, %v2167_v9  ;;  %v2164_v12 = vpop.xlane.xlu0 %2163  ;;  %v1676_v9 = vld [vmem:[#allocation5 + $0x28] sm:$0xff] }
 0xe22   :  { %v2168_v13 = vsub.f32 %v2154_v42, %v2164_v12 }
 0xe23   :  { %v2172_v14 = vmul.f32 1.442695, %v2169_v11 }
 0xe24   :  { %v2170_v15 = vmul.f32 1.442695, %v2168_v13  ;;  %v2060_v16 = vpop.xlane.xlu1 %2059  ;;  %v3789_v13 = vpack.c.bf16 %v1676_v9, %v1675_v8  ;;  %v3178_v8 = vld [vmem:[%s4925_s16 + $0x78] sm:$0xff] }
 0xe25   :  { %3888 = vpow2.f32 %v2172_v14  ;;  %v2062_v17 = vsub.f32 %v2052_v48, %v2060_v16  ;;  %v2057_v18 = vpop.xlane.xlu0 %2056  ;;  %v1678_v16 = vld [vmem:[#allocation5 + $0x38] sm:$0xff] }
 0xe26   :  { %3890 = vpow2.f32 %v2170_v15  ;;  %v2061_v4 = vsub.f32 %v2047_v38, %v2057_v18 }
 0xe27   :  { %v2065_v19 = vmul.f32 1.442695, %v2062_v17 }
 0xe28   :  { %v2063_v1 = vmul.f32 1.442695, %v2061_v4  ;;  %v2436_v20 = vpop.xlane.xlu1 %2435 }
 0xe29   :  { %3892 = vpow2.f32 %v2065_v19  ;;  %v2438_v21 = vsub.f32 %v2428_v53, %v2436_v20  ;;  %v2433_v22 = vpop.xlane.xlu0 %2432 }
 0xe2a   :  { %3894 = vpow2.f32 %v2063_v1  ;;  %v2437_v10 = vsub.f32 %v2423_v55, %v2433_v22 }
 0xe2b   :  { %v2441_v5 = vmul.f32 1.442695, %v2438_v21 }
 0xe2c   :  { %v2439_v23 = vmul.f32 1.442695, %v2437_v10 }
 0xe2d   :  { %3896 = vpow2.f32 %v2441_v5 }
 0xe2e   :  { %3898 = vpow2.f32 %v2439_v23 }
 0xe2f   :  { %v3889_v24 = vpop.eup %3888 }
 0xe30   :  { %v3891_v63 = vpop.eup %3890  ;;  %v2626_v26 = vpop.xlane.xlu1 %2625  ;;  %v2177_v30 = vsel %vm602_vm2, %v3889_v24, 0.0 }
 0xe31   :  { %v2628_v31 = vsub.f32 %v2618_v2, %v2626_v26  ;;  %2178 = vadd.xlane.f32.xlu1 %v2177_v30  ;;  %v2623_v32 = vpop.xlane.xlu0 %2622  ;;  %v2174_v40 = vsel %vm602_vm2, %v3891_v63, 0.0 }
 0xe32   :  { %v2627_v33 = vsub.f32 %v2613_v7, %v2623_v32  ;;  %2175 = vadd.xlane.f32.xlu0 %v2174_v40 }
 0xe33   :  { %v3893_v34 = vpop.eup %3892  ;;  %v2631_v35 = vmul.f32 1.442695, %v2628_v31 }
 0xe34   :  { %v3895_v41 = vpop.eup %3894  ;;  %v2629_v36 = vmul.f32 1.442695, %v2627_v33  ;;  %v2070_v37 = vsel %vm602_vm2, %v3893_v34, 0.0 }
 0xe35   :  { %3900 = vpow2.f32 %v2631_v35  ;;  %2071 = vadd.xlane.f32.xlu1 %v2070_v37  ;;  %v2067_v0 = vsel %vm602_vm2, %v3895_v41, 0.0  ;;  %v1688_v37 = vld [vmem:[#allocation11 + $0x30] sm:$0xff] }
 0xe36   :  { %3902 = vpow2.f32 %v2629_v36  ;;  %2068 = vadd.xlane.f32.xlu0 %v2067_v0  ;;  %v1689_v0 = vld [vmem:[#allocation11 + $0x38] sm:$0xff] }
 0xe37   :  { %v3897_v28 = vpop.eup %3896 }
 0xe38   :  { %v3899_v29 = vpop.eup %3898  ;;  %v2446_v39 = vsel %vm602_vm2, %v3897_v28, 0.0 }
 0xe39   :  { %2447 = vadd.xlane.f32.xlu1 %v2446_v39  ;;  %v2443_v43 = vsel %vm602_vm2, %v3899_v29, 0.0  ;;  %v3172_v39 = vld [vmem:[%s4925_s16 + $0x48] sm:$0xff] }
 0xe3a   :  { %2444 = vadd.xlane.f32.xlu0 %v2443_v43  ;;  %v3173_v43 = vld [vmem:[%s4925_s16 + $0x50] sm:$0xff] }
 0xe3f   :  { %v3901_v44 = vpop.eup %3900 }
 0xe40   :  { %v3903_v45 = vpop.eup %3902  ;;  %v2636_v46 = vsel %vm602_vm2, %v3901_v44, 0.0 }
 0xe41   :  { %2637 = vadd.xlane.f32.xlu1 %v2636_v46  ;;  %v2633_v47 = vsel %vm602_vm2, %v3903_v45, 0.0 }
 0xe42   :  { %2634 = vadd.xlane.f32.xlu0 %v2633_v47  ;;  %v3175_v47 = vld [vmem:[%s4925_s16 + $0x60] sm:$0xff] }
 0xebe   :  { %v2179_v42 = vpop.xlane.xlu1 %2178 }
 0xebf   :  { %3904 = vrcp.f32 %v2179_v42  ;;  %v2176_v48 = vpop.xlane.xlu0 %2175  ;;  %v3176_v42 = vld [vmem:[%s4925_s16 + $0x68] sm:$0xff] }
 0xec0   :  { %3906 = vrcp.f32 %v2176_v48  ;;  %v3813_v48 = vpack.c.bf16 %v3176_v42, %v3175_v47 }
 0xec2   :  { %v2072_v38 = vpop.xlane.xlu1 %2071 }
 0xec3   :  { %v2069_v49 = vpop.xlane.xlu0 %2068 }
 0xec4   :  { %3908 = vrcp.f32 %v2069_v49 }
 0xec5   :  { %3910 = vrcp.f32 %v2072_v38 }
 0xec6   :  { %v2448_v54 = vpop.xlane.xlu1 %2447 }
 0xec7   :  { %v2445_v50 = vpop.xlane.xlu0 %2444 }
 0xec8   :  { %3912 = vrcp.f32 %v2445_v50 }
 0xec9   :  { %v3905_v57 = vpop.eup %3904  ;;  %3914 = vrcp.f32 %v2448_v54  ;;  %v3215_v54 = vld [vmem:[#allocation8 + $0x1] ss:$0 sm:$0xff] }
 0xeca   :  { %v3907_v51 = vpop.eup %3906  ;;  %v2183_v53 = vmul.f32 %v3905_v57, %v3889_v24 }
 0xecb   :  { %v2182_v52 = vmul.f32 %v3907_v51, %v3891_v63 }
 0xecd   :  { %3550 = vmatprep.mubr.msk.f32.mxu0 %vm602_vm2, %v2182_v52 }
 0xece   :  { %v3909_v55 = vpop.eup %3908  ;;  %3551 = vmatmul.mubr.msk.f32.vlgmr.msra.gmra.mrb[16].mxu0 %vm602_vm2, %v2183_v53  ;;  %v2638_v7 = vpop.xlane.xlu1 %2637 }
 0xecf   :  { %3768 = vmatpush3.bf16.msra.mxu0 %v4773_v58  ;;  %v2635_v56 = vpop.xlane.xlu0 %2634  ;;  %v2075_v61 = vmul.f32 %v3909_v55, %v3895_v41  ;;  %v3911_v62 = vpop.eup %3910  ;;  %v1687_v41 = vld [vmem:[#allocation11 + $0x28] sm:$0xff] }
 0xed0   :  { %3776 = vmatprep.subr.bf16.mxu0 %v4775_v25  ;;  %3916 = vrcp.f32 %v2635_v56  ;;  %v2076_v3 = vmul.f32 %v3911_v62, %v3893_v34  ;;  %v3216_v62 = vld [vmem:[#allocation10 + $0x1] ss:$0 sm:$0xff] }
 0xed1   :  { %3557 = vmatprep.mubr.msk.f32.mxu0 %vm602_vm2, %v2075_v61  ;;  %3918 = vrcp.f32 %v2638_v7 }
 0xed2   :  { %v3913_v2 = vpop.eup %3912 }
 0xed3   :  { %v2451_v6 = vmul.f32 %v3913_v2, %v3899_v29  ;;  %v3915_v58 = vpop.eup %3914  ;;  %v3171_v29 = vld [vmem:[%s4925_s16 + $0x40] sm:$0xff] }
 0xed4   :  { %v2452_v12 = vmul.f32 %v3915_v58, %v3897_v28  ;;  %v3801_v28 = vpack.c.bf16 %v1689_v0, %v1688_v37  ;;  %v3177_v58 = vld [vmem:[%s4925_s16 + $0x70] sm:$0xff]  ;;  %v3223_v37 = vld [vmem:[#allocation16 + $0x1] ss:$0 sm:$0xff] }
 0xed5   :  { %v3817_v9 = vpack.c.bf16 %v3178_v8, %v3177_v58 }
 0xed6   :  { %3558 = vmatmul.mubr.msk.f32.vlgmr.msra.gmra.mrb[16].mxu0 %vm602_vm2, %v2076_v3 }
 0xed7   :  { %3778 = vmatpush3.bf16.msra.mxu0 %v4775_v25  ;;  %3571 = vmatprep.mubr.msk.f32.mxu0 %vm602_vm2, %v2451_v6  ;;  %v1677_v25 = vld [vmem:[#allocation5 + $0x30] sm:$0xff] }
 0xed8   :  { %3786 = vmatprep.subr.bf16.mxu0 %v4782_v27  ;;  %v3793_v18 = vpack.c.bf16 %v1678_v16, %v1677_v25 }
 0xeda   :  { %v3917_v11 = vpop.eup %3916 }
 0xedb   :  { %v2641_v14 = vmul.f32 %v3917_v11, %v3903_v45  ;;  %v3919_v15 = vpop.eup %3918  ;;  %v3174_v45 = vld [vmem:[%s4925_s16 + $0x58] sm:$0xff]  ;;  %v3217_v11 = vld [vmem:[#allocation13 + $0x1] ss:$0 sm:$0xff]  ;;  %s4198_s16 = smov [#allocation19]  }
 0xedc   :  { %v2642_v17 = vmul.f32 %v3919_v15, %v3901_v44  ;;  %v3805_v44 = vpack.c.bf16 %v3172_v39, %v3171_v29  ;;  %v3809_v46 = vpack.c.bf16 %v3174_v45, %v3173_v43  ;;  %v3224_v39 = vld [vmem:[#allocation17 + $0x1] ss:$0 sm:$0xff]  ;;  %s3086_s8 = sshll.u32 %s4198_s16, 4  ;;  %s3087_s8 = int_to_ptr.vmem [resolvable:$true] %s3086_s8 }
 0xedd   :  { %s4148_s10 = scalar_lea.vmem %s3087_s8, 256  ;;  %p4153_p11 = scmp.lt.s32.totalorder %s3087_s8, %s3087_s8 }
 0xede   :  { %3572 = vmatmul.mubr.msk.f32.vlgmr.msra.gmra.mrb[16].mxu0 %vm602_vm2, %v2452_v12  ;;  %p4149_p10 = scmp.ne.s32.totalorder %s3087_s8, %s4148_s10  ;;  %p4154_p12 = scmp.lt.s32.totalorder %s4148_s10, %s4148_s10 }
 0xedf   :  { %3788 = vmatpush3.bf16.msra.mxu0 %v4782_v27  ;;  %3585 = vmatprep.mubr.msk.f32.mxu0 %vm602_vm2, %v2641_v14  ;;  %v3212_v27 = vld [vmem:[#allocation7 + $0x1] ss:$0 sm:$0xff] }
 0xee0   :  { %3790 = vmatprep.subr.bf16.mxu0 %v3789_v13  ;;  %p4155_p13 = por %p4154_p12, %p4153_p11 }
 0xee2   :  { %p4156_p0 = pnand %p4155_p13, %p4149_p10 }
 0xee6   :  { %3586 = vmatmul.mubr.msk.f32.vlgmr.msra.gmra.mrb[16].mxu0 %vm602_vm2, %v2642_v17  ;;  %v3220_v17 = vld [vmem:[#allocation14 + $0x1] ss:$0 sm:$0xff] }
 0xee7   :  { %3792 = vmatpush3.bf16.msra.mxu0 %v3789_v13 }
 0xee8   :  { %3794 = vmatprep.subr.bf16.mxu0 %v3793_v18 }
 0xeeb   :  { %3796 = vmatpush3.bf16.msra.mxu0 %v3793_v18 }
 0xeec   :  { %3806 = vmatprep.subr.bf16.mxu0 %v3805_v44 }
 0xfb9   :  { %v3587_v4 = vpop.f32.mrb[16].mxu0 }
 0xfba   :  { %v2717_v19 = vpop.f32.mrb[17].mxu0 }
 0xfbb   :  { %3596 = vmatprep.mubr.msk.f32.mxu0 %vm254_vm0, %v2717_v19 }
 0xfbc   :  { %3597 = vmatmul.mubr.msk.f32.vlgmr.msra.gmra.mrb[18].mxu0 %vm254_vm0, %v3587_v4 }
 0xfbd   :  { %3808 = vmatpush3.bf16.msra.mxu0 %v3805_v44 }
 0xfbe   :  { %3810 = vmatprep.subr.bf16.mxu0 %v3809_v46 }
 0xfc1   :  { %3812 = vmatpush3.bf16.msra.mxu0 %v3809_v46 }
 0xfc2   :  { %3814 = vmatprep.subr.bf16.mxu0 %v3813_v48 }
 0xfc5   :  { %3816 = vmatpush3.bf16.msra.mxu0 %v3813_v48 }
 0xfc6   :  { %3818 = vmatprep.subr.bf16.mxu0 %v3817_v9 }
 0xfc9   :  { %3820 = vmatpush3.bf16.msra.mxu0 %v3817_v9 }
0x108f   :  { %v3598_v1 = vpop.f32.mrb[18].mxu0 }
0x1090   :  { %v2812_v20 = vadd.f32 %v3598_v1, %v3212_v27  ;;  %v2806_v21 = vpop.f32.mrb[19].mxu0 }
0x1091   :  { %v2807_v22 = vadd.f32 %v3212_v27, %v2806_v21 }
0x1092   :  { %v2816_v10 = vadd.f32 %v2812_v20, %v4737_v59 }
0x1093   :  { %v2815_v5 = vadd.f32 %v2807_v22, %v4739_v60  ;;  %v1686_v60 = vld [vmem:[#allocation11 + $0x20] sm:$0xff] }
0x1094   :  { %v2820_v23 = vsel %vm254_vm0, %v2816_v10, 0.0  ;;  %v3797_v36 = vpack.c.bf16 %v1687_v41, %v1686_v60 }
0x1095   :  { %2821 = vadd.xlane.f32.xlu1 %v2820_v23  ;;  %v2817_v24 = vsel %vm254_vm0, %v2815_v5, 0.0 }
0x1096   :  { %2818 = vadd.xlane.f32.xlu0 %v2817_v24  ;;  %3798 = vmatprep.subr.bf16.mxu1 %v3797_v36 }
0x1097   :  { %3800 = vmatpush3.bf16.msra.mxu1 %v3797_v36 }
0x1098   :  { %3802 = vmatprep.subr.bf16.mxu1 %v3801_v28 }
0x109b   :  { %3804 = vmatpush3.bf16.msra.mxu1 %v3801_v28 }
0x1122   :  { %v2822_v63 = vpop.xlane.xlu1 %2821 }
0x1123   :  { %v2824_v26 = vmul.f32 0.03125, %v2822_v63  ;;  %v2819_v30 = vpop.xlane.xlu0 %2818 }
0x1124   :  { %v2823_v31 = vmul.f32 0.03125, %v2819_v30 }
0x1125   :  { %v2826_v32 = vsub.f32 %v2816_v10, %v2824_v26 }
0x1126   :  { %v2825_v40 = vsub.f32 %v2815_v5, %v2823_v31 }
0x1127   :  { %v2828_v33 = vmul.f32 %v2826_v32, %v2826_v32 }
0x1128   :  { %v2827_v34 = vmul.f32 %v2825_v40, %v2825_v40 }
0x1129   :  { %v2832_v35 = vsel %vm254_vm0, %v2828_v33, 0.0 }
0x112a   :  { %2833 = vadd.xlane.f32.xlu1 %v2832_v35  ;;  %v2829_v59 = vsel %vm254_vm0, %v2827_v34, 0.0 }
0x112b   :  { %2830 = vadd.xlane.f32.xlu0 %v2829_v59 }
0x11b7   :  { %v2834_v49 = vpop.xlane.xlu1 %2833 }
0x11b8   :  { %v2836_v38 = vmul.f32 0.03125, %v2834_v49  ;;  %v2831_v50 = vpop.xlane.xlu0 %2830 }
0x11b9   :  { %v2835_v57 = vmul.f32 0.03125, %v2831_v50 }
0x11ba   :  { %v2838_v51 = vadd.f32 1e-05, %v2836_v38 }
0x11bb   :  { %v2837_v52 = vadd.f32 1e-05, %v2835_v57 }
0x11bc   :  { %3920 = vrsqrt.f32 %v2838_v51 }
0x11bd   :  { %3922 = vrsqrt.f32 %v2837_v52 }
0x11c6   :  { %v3921_v53 = vpop.eup %3920 }
0x11c7   :  { %v3923_v55 = vpop.eup %3922  ;;  %v2842_v56 = vmul.f32 %v3921_v53, %v2826_v32 }
0x11c8   :  { %v2841_v61 = vmul.f32 %v3923_v55, %v2825_v40 }
0x11c9   :  { %v2850_v2 = vmul.f32 %v3215_v54, %v2842_v56 }
0x11ca   :  { %v2849_v3 = vmul.f32 %v3215_v54, %v2841_v61 }
0x11cb   :  { %v2858_v6 = vadd.f32 %v3216_v62, %v2850_v2 }
0x11cc   :  { %v2857_v7 = vadd.f32 %v3216_v62, %v2849_v3 }
0x11ce   :  { %3607 = vmatprep.mubr.msk.f32.mxu1 %vm254_vm0, %v2857_v7 }
0x11cf   :  { %3608 = vmatmul.mubr.msk.f32.vlgmr.msra.gmra.mrb[20].mxu1 %vm254_vm0, %v2858_v6 }
0x12a2   :  { %v3609_v12 = vpop.f32.mrb[20].mxu1 }
0x12a3   :  { %v2943_v13 = vadd.f32 %v3609_v12, %v3217_v11  ;;  %v2937_v14 = vpop.f32.mrb[21].mxu1 }
0x12a4   :  { %v2938_v15 = vadd.f32 %v3217_v11, %v2937_v14 }
0x12a5   :  { %v2947_v16 = vmax.f32 %v2943_v13, 0.0 }
0x12a6   :  { %v2946_v25 = vmax.f32 %v2938_v15, 0.0 }
0x12a8   :  { %3626 = vmatprep.mubr.msk.f32.mxu0 %vm1527_vm3, %v2946_v25 }
0x12a9   :  { %3627 = vmatmul.mubr.msk.f32.vlgmr.msra.gmra.mrb[20].mxu0 %vm1527_vm3, %v2947_v16 }
0x137c   :  { %v3628_v18 = vpop.f32.mrb[20].mxu0 }
0x137d   :  { %v3032_v4 = vadd.f32 %v3628_v18, %v3220_v17  ;;  %v3026_v19 = vpop.f32.mrb[21].mxu0 }
0x137e   :  { %v3027_v27 = vadd.f32 %v3220_v17, %v3026_v19 }
0x137f   :  { %v3036_v1 = vadd.f32 %v3032_v4, %v2858_v6 }
0x1380   :  { %v3035_v20 = vadd.f32 %v3027_v27, %v2857_v7 }
0x1381   :  { %v3040_v21 = vsel %vm254_vm0, %v3036_v1, 0.0 }
0x1382   :  { %3041 = vadd.xlane.f32.xlu1 %v3040_v21  ;;  %v3037_v22 = vsel %vm254_vm0, %v3035_v20, 0.0 }
0x1383   :  { %3038 = vadd.xlane.f32.xlu0 %v3037_v22 }
0x140f   :  { %v3042_v10 = vpop.xlane.xlu1 %3041 }
0x1410   :  { %v3044_v5 = vmul.f32 0.03125, %v3042_v10  ;;  %v3039_v23 = vpop.xlane.xlu0 %3038 }
0x1411   :  { %v3043_v24 = vmul.f32 0.03125, %v3039_v23 }
0x1412   :  { %v3046_v63 = vsub.f32 %v3036_v1, %v3044_v5 }
0x1413   :  { %v3045_v26 = vsub.f32 %v3035_v20, %v3043_v24 }
0x1414   :  { %v3048_v30 = vmul.f32 %v3046_v63, %v3046_v63 }
0x1415   :  { %v3047_v31 = vmul.f32 %v3045_v26, %v3045_v26 }
0x1416   :  { %v3052_v32 = vsel %vm254_vm0, %v3048_v30, 0.0 }
0x1417   :  { %3053 = vadd.xlane.f32.xlu1 %v3052_v32  ;;  %v3049_v40 = vsel %vm254_vm0, %v3047_v31, 0.0 }
0x1418   :  { %3050 = vadd.xlane.f32.xlu0 %v3049_v40 }
0x14a4   :  { %v3054_v33 = vpop.xlane.xlu1 %3053 }
0x14a5   :  { %v3056_v34 = vmul.f32 0.03125, %v3054_v33  ;;  %v3051_v35 = vpop.xlane.xlu0 %3050 }
0x14a6   :  { %v3055_v59 = vmul.f32 0.03125, %v3051_v35 }
0x14a7   :  { %v3058_v60 = vadd.f32 1e-05, %v3056_v34 }
0x14a8   :  { %v3057_v41 = vadd.f32 1e-05, %v3055_v59 }
0x14a9   :  { %3924 = vrsqrt.f32 %v3058_v60 }
0x14aa   :  { %3926 = vrsqrt.f32 %v3057_v41 }
0x14b3   :  { %v3925_v36 = vpop.eup %3924 }
0x14b4   :  { %v3927_v0 = vpop.eup %3926  ;;  %v3062_v28 = vmul.f32 %v3925_v36, %v3046_v63 }
0x14b5   :  { %v3061_v29 = vmul.f32 %v3927_v0, %v3045_v26 }
0x14b6   :  { %v3070_v43 = vmul.f32 %v3223_v37, %v3062_v28 }
0x14b7   :  { %v3069_v44 = vmul.f32 %v3223_v37, %v3061_v29 }
0x14b8   :  { %v3078_v45 = vadd.f32 %v3224_v39, %v3070_v43 }
0x14b9   :  { %v3077_v46 = vadd.f32 %v3224_v39, %v3069_v44 }
0x14ba   :  { %3080 = vst.msk [vmem:[#allocation19 + $0x8] sm:$0xff] %vm254_vm0, %v3078_v45 }
0x14bb   :  { %3079 = vst.msk [vmem:[#allocation19] sm:$0xff] %vm254_vm0, %v3077_v46 }
0x14bc   :  { %4159 = shalt.err (!%p4156_p0)
}
0x14bd   :  { %s4949_s2 = sld [smem:[#allocation32_spill]] }
0x14c3   :  { %s4160_s18 = scalar_lea.hbm %s4949_s2, 256 }
0x14c4   :  { %p4161_p1 = scmp.ne.s32.totalorder %s4949_s2, %s4160_s18  ;;  %p4164_p2 = scmp.lt.u32.totalorder %s4160_s18, %s4949_s2 }
0x14c6   :  { %p4166_p3 = pnand %p4164_p2, %p4161_p1 }
0x14c8   :  { %4169 = shalt.err (!%p4166_p3)
}
0x14c9   :  { %3092 = dma.vmem_to_hbm [thread:$0]  %s3087_s8, 256, %s4949_s2, [#allocation4], %s4185_s4, %s4185_s4, %s4186_s29  }
0x14ca   :  { %4182 = dma.done.wait [#allocation4], 256  }
0x14cb   :  { %4183 = vsyncadd [#allocation4], 4294967040 }
0x14cc   :  { %3096 = vsyncpa [#allocation3], 1 }
0x14cd   :  { %3097 = vsyncpa [#allocation6], 1 }
0x14ce   :  { %3098 = vsyncpa [#allocation9], 1 }
0x14cf   :  { %3099 = vsyncpa [#allocation12], 1 }
0x14d0   :  { %3100 = vsyncpa [#allocation15], 1 }
0x14d1   :  { %3101 = vsyncpa [#allocation18], 1 }
0x14d2   :  { %3102 = vsyncpa [#allocation4], 1 }

</bundles_post_ra>
